<compile_context>
chip_gen: v7x
topology: tpu7x:2x2x1
jax: 0.10.0
libtpu: 0.0.40
codegen_flags: <defaults>
</compile_context>

<pallas_src>
from functools import partial

import jax
import jax.numpy as jnp
from jax.experimental import pallas as pl
from jax.experimental.pallas import tpu as pltpu


def _encoder_kernel(src_ref, pos_ref,
                    wqk_ref, bqk_ref, wv_ref, bv_ref,
                    wo_ref, bo_ref,
                    g1_ref, beta1_ref,
                    w1_ref, b1_ref, w2_ref, b2_ref,
                    g2_ref, beta2_ref,
                    out_ref, attnw_ref,
                    x_scr,
                    *, nhead, m_chunk):
    """One grid step = one encoder layer applied to one batch tile.

    grid = (batch_tiles, num_layers); activations persist in x_scr across the layer
    axis; HBM outputs are written only on the last layer step.
    """
    layer = pl.program_id(1)
    last_layer = pl.num_programs(1) - 1

    BT, S, D = src_ref.shape          # batch tile, seq, d_model
    M = BT * S                        # batch fused into the matmul M dimension
    hd = D // nhead
    G = BT * nhead                    # folded (head, batch) einsum batch dim

    # Layer 0: load the source activations into the persistent VMEM scratch.
    @pl.when(layer == 0)
    def _():
        x_scr[...] = src_ref[...].reshape(M, D).astype(jnp.float32)

    x = x_scr[...]                                          # (M, D) f32
    pos = pos_ref[...].reshape(M, D).astype(jnp.float32)    # (M, D) f32

    # ---- multi-head self-attention: q = k = x + pos, v = x ----
    # Fused Q/K projection; weights are bf16 (in, out); accumulate in f32.
    xq = (x + pos).astype(jnp.bfloat16)
    qk = jnp.dot(xq, wqk_ref[...],
                 preferred_element_type=jnp.float32) + bqk_ref[...]        # (M, 2D)
    v = jnp.dot(x.astype(jnp.bfloat16), wv_ref[...],
                preferred_element_type=jnp.float32) + bv_ref[...]          # (M, D)

    def split_heads(t):
        # (M, D) -> (nhead*BT, S, hd); leading dim ordered (head, batch).
        t = t.reshape(M, nhead, hd)
        t = pltpu.einshape("mhd->hmd", t)                                  # (nhead, M, hd)
        return t.reshape(G, S, hd)

    qh = split_heads(qk[:, :D]).astype(jnp.bfloat16)
    kh = split_heads(qk[:, D:]).astype(jnp.bfloat16)
    vh = split_heads(v).astype(jnp.bfloat16)

    # 1/sqrt(hd) is folded into wqk/bqk at init, so no scale here.
    s = jnp.einsum('bqd,bkd->bqk', qh, kh,
                   preferred_element_type=jnp.float32)                     # (G, S, S) f32
    s = s - jnp.max(s, axis=-1, keepdims=True)
    e = jnp.exp(s)
    p = e * pl.reciprocal(jnp.sum(e, axis=-1, keepdims=True), approx=True)

    ctx = jnp.einsum('bqk,bkd->bqd', p.astype(jnp.bfloat16), vh,
                     preferred_element_type=jnp.float32)                   # (G, S, hd)
    ctx = ctx.reshape(nhead, M, hd)
    ctx = pltpu.einshape("hmd->mhd", ctx).reshape(M, D)                    # (M, D)

    attn = jnp.dot(ctx.astype(jnp.bfloat16), wo_ref[...],
                   preferred_element_type=jnp.float32) + bo_ref[...]

    # Head-averaged attention weights are only needed on the last layer.
    @pl.when(layer == last_layer)
    def _():
        attnw_ref[...] = (jnp.sum(p.reshape(nhead, BT, S, S), axis=0)
                          * (1.0 / nhead)).astype(attnw_ref.dtype)

    # ---- residual + LayerNorm 1 (f32) ----
    x1 = x + attn
    mu = jnp.mean(x1, axis=-1, keepdims=True)
    xc = x1 - mu
    var = jnp.mean(xc * xc, axis=-1, keepdims=True)
    x1 = xc * jax.lax.rsqrt(var + 1e-5) * g1_ref[...] + beta1_ref[...]
    x_scr[...] = x1          # FFN reads row chunks back from the scratch

    # ---- feed-forward + residual + LayerNorm 2, chunked over the fused M dim ----
    n_chunks = M // m_chunk

    def ffn_chunk(c, carry):
        start = c * m_chunk
        if m_chunk % 8 == 0:
            start = pl.multiple_of(start, 8)
        x1c = x_scr[pl.ds(start, m_chunk), :]                              # (m_chunk, D)
        h1 = jnp.dot(x1c.astype(jnp.bfloat16), w1_ref[...],
                     preferred_element_type=jnp.float32) + b1_ref[...]
        h1 = jnp.maximum(h1, 0.0)                                          # relu
        ff = jnp.dot(h1.astype(jnp.bfloat16), w2_ref[...],
                     preferred_element_type=jnp.float32) + b2_ref[...]
        y = x1c + ff
        mu2 = jnp.mean(y, axis=-1, keepdims=True)
        yc = y - mu2
        var2 = jnp.mean(yc * yc, axis=-1, keepdims=True)
        y = yc * jax.lax.rsqrt(var2 + 1e-5) * g2_ref[...] + beta2_ref[...]
        x_scr[pl.ds(start, m_chunk), :] = y
        return carry

    jax.lax.fori_loop(0, n_chunks, ffn_chunk, 0)

    # Only the final layer writes the activation block to HBM.
    @pl.when(layer == last_layer)
    def _():
        out_ref[...] = x_scr[...].reshape(BT, S, D).astype(out_ref.dtype)


def _pick_m_chunk(m, target=512):
    """Largest divisor of m that is <= target and a multiple of 8 (else m itself)."""
    if m <= target:
        return m
    for c in range(target, 7, -1):
        if m % c == 0 and c % 8 == 0:
            return c
    return m


def transformer_encoder_forward(src, pos, params, num_layers, nhead,
                                b_tile=None, vmem_limit_bytes=48 * 1024 * 1024):
    """src, pos: (S, B, D) -> (output (S, B, D), last-layer attn weights (B, S, S)).

    b_tile: batch elements per grid step (default B). On v7x use b_tile <= B//2 so the
    'parallel' batch axis feeds both TensorCores and the per-step VMEM fits 64 MiB.
    """
    S, B, D = src.shape
    assert D % nhead == 0
    x = jnp.transpose(src, (1, 0, 2))       # (B, S, D)
    ps = jnp.transpose(pos, (1, 0, 2))

    if b_tile is None:
        b_tile = B
    assert B % b_tile == 0
    nb = B // b_tile
    Fdim = params["w1"].shape[1]            # w1 stored pre-transposed (D, F), bf16
    M = b_tile * S
    m_chunk = _pick_m_chunk(M)

    def wspec(shape):
        # Resident parameters: constant index_map, single-buffered (never re-DMA'd).
        return pl.BlockSpec(shape, lambda b, l: (0, 0), pipeline_mode=pl.Buffered(1))

    in_specs = [
        pl.BlockSpec((b_tile, S, D), lambda b, l: (b, 0, 0)),   # src
        pl.BlockSpec((b_tile, S, D), lambda b, l: (b, 0, 0)),   # pos
        wspec((D, 2 * D)), wspec((1, 2 * D)),                   # wqk, bqk
        wspec((D, D)), wspec((1, D)),                           # wv, bv
        wspec((D, D)), wspec((1, D)),                           # wo, bo
        wspec((1, D)), wspec((1, D)),                           # ln1 gamma / beta
        wspec((D, Fdim)), wspec((1, Fdim)),                     # w1, b1
        wspec((Fdim, D)), wspec((1, D)),                        # w2, b2
        wspec((1, D)), wspec((1, D)),                           # ln2 gamma / beta
    ]
    out_specs = (pl.BlockSpec((b_tile, S, D), lambda b, l: (b, 0, 0)),
                 pl.BlockSpec((b_tile, S, S), lambda b, l: (b, 0, 0)))
    out_shape = (jax.ShapeDtypeStruct((B, S, D), jnp.float32),
                 jax.ShapeDtypeStruct((B, S, S), jnp.float32))

    cost = pl.CostEstimate(
        flops=int(num_layers * B * (8 * S * D * D + 4 * S * S * D + 4 * S * D * Fdim)),
        transcendentals=int(num_layers * B * nhead * S * S),
        bytes_accessed=int(3 * B * S * D * 4 + B * S * S * 4
                           + (4 * D * D + 2 * D * Fdim) * 2
                           + (9 * D + Fdim) * 4),
    )

    kernel = partial(_encoder_kernel, nhead=nhead, m_chunk=m_chunk)
    out, attnw = pl.pallas_call(
        kernel,
        grid=(nb, num_layers),
        in_specs=in_specs,
        out_specs=out_specs,
        out_shape=out_shape,
        scratch_shapes=[pltpu.VMEM((M, D), jnp.float32)],
        compiler_params=pltpu.CompilerParams(
            dimension_semantics=("parallel", "arbitrary"),
            vmem_limit_bytes=vmem_limit_bytes),
        cost_estimate=cost,
    )(x, ps,
      params["wqk"], params["bqk"], params["wv"], params["bv"],
      params["wo"], params["bo"],
      params["g1"], params["beta1"],
      params["w1"], params["b1"], params["w2"], params["b2"],
      params["g2"], params["beta2"])
    return jnp.transpose(out, (1, 0, 2)), attnw


def init_params(key, d_model, dim_feedforward, nhead):
    """Matmul weights pre-transposed to (in, out) and stored bf16; q/k fused along the
    output dim; 1/sqrt(head_dim) folded into the Q half of wqk (and bqk if nonzero)."""
    ks = jax.random.split(key, 6)
    s = 0.02
    D, F = d_model, dim_feedforward
    scale = 1.0 / ((D // nhead) ** 0.5)
    wq = s * jax.random.normal(ks[0], (D, D), jnp.float32) * scale
    wk = s * jax.random.normal(ks[1], (D, D), jnp.float32)
    return {
        "wqk": jnp.concatenate([wq, wk], axis=1).astype(jnp.bfloat16),     # (D, 2D)
        "bqk": jnp.zeros((1, 2 * D), jnp.float32),
        "wv": (s * jax.random.normal(ks[2], (D, D), jnp.float32)).astype(jnp.bfloat16),
        "bv": jnp.zeros((1, D), jnp.float32),
        "wo": (s * jax.random.normal(ks[3], (D, D), jnp.float32)).astype(jnp.bfloat16),
        "bo": jnp.zeros((1, D), jnp.float32),
        "g1": jnp.ones((1, D), jnp.float32),
        "beta1": jnp.zeros((1, D), jnp.float32),
        "w1": (s * jax.random.normal(ks[4], (D, F), jnp.float32)).astype(jnp.bfloat16),
        "b1": jnp.zeros((1, F), jnp.float32),
        "w2": (s * jax.random.normal(ks[5], (F, D), jnp.float32)).astype(jnp.bfloat16),
        "b2": jnp.zeros((1, D), jnp.float32),
        "g2": jnp.ones((1, D), jnp.float32),
        "beta2": jnp.zeros((1, D), jnp.float32),
    }


if __name__ == "__main__":
    S, B, D = 8, 2, 32          # seq, batch, d_model
    NHEAD, FF, LAYERS = 4, 64, 2

    key = jax.random.PRNGKey(0)
    k_src, k_pos, k_par = jax.random.split(key, 3)
    src = jax.random.normal(k_src, (S, B, D), jnp.float32)
    pos = jax.random.normal(k_pos, (S, B, D), jnp.float32)
    params = init_params(k_par, D, FF, NHEAD)

    out, attn_weights = transformer_encoder_forward(src, pos, params, LAYERS, NHEAD)
    out = jax.block_until_ready(out)
    attn_weights = jax.block_until_ready(attn_weights)

    assert out.shape == (S, B, D)
    assert attn_weights.shape == (B, S, S)
    assert bool(jnp.isfinite(out).all()) and bool(jnp.isfinite(attn_weights).all())
    print("KERNEL_OK")
</pallas_src>

<mosaic_0001>
module attributes {stable_mosaic.version = 11 : i64} {
  func.func @_encoder_kernel(%arg0: i32, %arg1: i32, %arg2: memref<2x8x32xf32, #tpu.memory_space<vmem>>, %arg3: memref<2x8x32xf32, #tpu.memory_space<vmem>>, %arg4: memref<32x64xbf16, #tpu.memory_space<vmem>>, %arg5: memref<1x64xf32, #tpu.memory_space<vmem>>, %arg6: memref<32x32xbf16, #tpu.memory_space<vmem>>, %arg7: memref<1x32xf32, #tpu.memory_space<vmem>>, %arg8: memref<32x32xbf16, #tpu.memory_space<vmem>>, %arg9: memref<1x32xf32, #tpu.memory_space<vmem>>, %arg10: memref<1x32xf32, #tpu.memory_space<vmem>>, %arg11: memref<1x32xf32, #tpu.memory_space<vmem>>, %arg12: memref<32x64xbf16, #tpu.memory_space<vmem>>, %arg13: memref<1x64xf32, #tpu.memory_space<vmem>>, %arg14: memref<64x32xbf16, #tpu.memory_space<vmem>>, %arg15: memref<1x32xf32, #tpu.memory_space<vmem>>, %arg16: memref<1x32xf32, #tpu.memory_space<vmem>>, %arg17: memref<1x32xf32, #tpu.memory_space<vmem>>, %arg18: memref<2x8x32xf32, #tpu.memory_space<vmem>>, %arg19: memref<2x8x8xf32, #tpu.memory_space<vmem>>, %arg20: memref<16x32xf32, #tpu.memory_space<vmem>>) attributes {dimension_semantics = [#tpu.dimension_semantics<parallel>, #tpu.dimension_semantics<arbitrary>], iteration_bounds = array<i64: 1, 2>, scalar_prefetch = 0 : i64, scratch_operands = 1 : i64, tpu.core_type = #tpu.core_type<tc>, window_params = [{transform_indices = @transform_0, window_bounds = array<i64: 2, 8, 32>}, {transform_indices = @transform_1, window_bounds = array<i64: 2, 8, 32>}, {pipeline_mode = #tpu.pipeline_mode<synchronous>, transform_indices = @transform_2, window_bounds = array<i64: 32, 64>}, {pipeline_mode = #tpu.pipeline_mode<synchronous>, transform_indices = @transform_3, window_bounds = array<i64: 1, 64>}, {pipeline_mode = #tpu.pipeline_mode<synchronous>, transform_indices = @transform_4, window_bounds = array<i64: 32, 32>}, {pipeline_mode = #tpu.pipeline_mode<synchronous>, transform_indices = @transform_5, window_bounds = array<i64: 1, 32>}, {pipeline_mode = #tpu.pipeline_mode<synchronous>, transform_indices = @transform_6, window_bounds = array<i64: 32, 32>}, {pipeline_mode = #tpu.pipeline_mode<synchronous>, transform_indices = @transform_7, window_bounds = array<i64: 1, 32>}, {pipeline_mode = #tpu.pipeline_mode<synchronous>, transform_indices = @transform_8, window_bounds = array<i64: 1, 32>}, {pipeline_mode = #tpu.pipeline_mode<synchronous>, transform_indices = @transform_9, window_bounds = array<i64: 1, 32>}, {pipeline_mode = #tpu.pipeline_mode<synchronous>, transform_indices = @transform_10, window_bounds = array<i64: 32, 64>}, {pipeline_mode = #tpu.pipeline_mode<synchronous>, transform_indices = @transform_11, window_bounds = array<i64: 1, 64>}, {pipeline_mode = #tpu.pipeline_mode<synchronous>, transform_indices = @transform_12, window_bounds = array<i64: 64, 32>}, {pipeline_mode = #tpu.pipeline_mode<synchronous>, transform_indices = @transform_13, window_bounds = array<i64: 1, 32>}, {pipeline_mode = #tpu.pipeline_mode<synchronous>, transform_indices = @transform_14, window_bounds = array<i64: 1, 32>}, {pipeline_mode = #tpu.pipeline_mode<synchronous>, transform_indices = @transform_15, window_bounds = array<i64: 1, 32>}, {transform_indices = @transform_16, window_bounds = array<i64: 2, 8, 32>}, {transform_indices = @transform_17, window_bounds = array<i64: 2, 8, 8>}]} {
    %c0_i32 = arith.constant 0 : i32
    %0 = arith.cmpi eq, %arg1, %c0_i32 : i32
    %1 = arith.extui %0 : i1 to i32
    %c0_i32_0 = arith.constant 0 : i32
    %2 = arith.cmpi ne, %1, %c0_i32_0 : i32
    scf.if %2 {
      %c0_61 = arith.constant 0 : index
      %c0_62 = arith.constant 0 : index
      %c0_63 = arith.constant 0 : index
      %128 = vector.load %arg2[%c0_61, %c0_62, %c0_63] : memref<2x8x32xf32, #tpu.memory_space<vmem>>, vector<2x8x32xf32>
      %129 = vector.shape_cast %128 : vector<2x8x32xf32> to vector<16x32xf32>
      %c0_64 = arith.constant 0 : index
      %c0_65 = arith.constant 0 : index
      %130 = vector.load %arg20[%c0_64, %c0_65] : memref<16x32xf32, #tpu.memory_space<vmem>>, vector<16x32xf32>
      tpu.vector_store %arg20[%c0_64, %c0_65], %129 {strides = array<i32>} : memref<16x32xf32, #tpu.memory_space<vmem>>, vector<16x32xf32>,
    } else {
    }
    %c0 = arith.constant 0 : index
    %c0_1 = arith.constant 0 : index
    %3 = vector.load %arg20[%c0, %c0_1] : memref<16x32xf32, #tpu.memory_space<vmem>>, vector<16x32xf32>
    %c0_2 = arith.constant 0 : index
    %c0_3 = arith.constant 0 : index
    %c0_4 = arith.constant 0 : index
    %4 = vector.load %arg3[%c0_2, %c0_3, %c0_4] : memref<2x8x32xf32, #tpu.memory_space<vmem>>, vector<2x8x32xf32>
    %5 = vector.shape_cast %4 : vector<2x8x32xf32> to vector<16x32xf32>
    %6 = arith.addf %3, %5 : vector<16x32xf32>
    %7 = arith.truncf %6 : vector<16x32xf32> to vector<16x32xbf16>
    %c0_5 = arith.constant 0 : index
    %c0_6 = arith.constant 0 : index
    %8 = vector.load %arg4[%c0_5, %c0_6] : memref<32x64xbf16, #tpu.memory_space<vmem>>, vector<32x64xbf16>
    %cst = arith.constant dense<0.000000e+00> : vector<16x64xf32>
    %9 = tpu.matmul %7, %8, %cst {dimension_numbers = #tpu.dot_dimension_numbers<[1], [0], [0], [1], [0, 0, 1, 1], [], []>} : vector<16x32xbf16>, vector<32x64xbf16>, vector<16x64xf32> -> vector<16x64xf32>
    %c0_7 = arith.constant 0 : index
    %c0_8 = arith.constant 0 : index
    %10 = vector.load %arg5[%c0_7, %c0_8] : memref<1x64xf32, #tpu.memory_space<vmem>>, vector<1x64xf32>
    %11 = vector.broadcast %10 : vector<1x64xf32> to vector<16x64xf32>
    %12 = arith.addf %9, %11 : vector<16x64xf32>
    %13 = arith.truncf %3 : vector<16x32xf32> to vector<16x32xbf16>
    %c0_9 = arith.constant 0 : index
    %c0_10 = arith.constant 0 : index
    %14 = vector.load %arg6[%c0_9, %c0_10] : memref<32x32xbf16, #tpu.memory_space<vmem>>, vector<32x32xbf16>
    %cst_11 = arith.constant dense<0.000000e+00> : vector<16x32xf32>
    %15 = tpu.matmul %13, %14, %cst_11 {dimension_numbers = #tpu.dot_dimension_numbers<[1], [0], [0], [1], [0, 0, 1, 1], [], []>} : vector<16x32xbf16>, vector<32x32xbf16>, vector<16x32xf32> -> vector<16x32xf32>
    %c0_12 = arith.constant 0 : index
    %c0_13 = arith.constant 0 : index
    %16 = vector.load %arg7[%c0_12, %c0_13] : memref<1x32xf32, #tpu.memory_space<vmem>>, vector<1x32xf32>
    %17 = vector.broadcast %16 : vector<1x32xf32> to vector<16x32xf32>
    %18 = arith.addf %15, %17 : vector<16x32xf32>
    %19 = vector.extract_strided_slice %12 {offsets = [0, 0], sizes = [16, 32], strides = [1, 1]} : vector<16x64xf32> to vector<16x32xf32>
    %20 = vector.shape_cast %19 : vector<16x32xf32> to vector<16x4x8xf32>
    %21 = tpu.transpose %20, [1, 0, 2] : vector<16x4x8xf32> -> vector<4x16x8xf32>
    %22 = vector.shape_cast %21 : vector<4x16x8xf32> to vector<8x8x8xf32>
    %23 = arith.truncf %22 : vector<8x8x8xf32> to vector<8x8x8xbf16>
    %24 = vector.extract_strided_slice %12 {offsets = [0, 32], sizes = [16, 32], strides = [1, 1]} : vector<16x64xf32> to vector<16x32xf32>
    %25 = vector.shape_cast %24 : vector<16x32xf32> to vector<16x4x8xf32>
    %26 = tpu.transpose %25, [1, 0, 2] : vector<16x4x8xf32> -> vector<4x16x8xf32>
    %27 = vector.shape_cast %26 : vector<4x16x8xf32> to vector<8x8x8xf32>
    %28 = arith.truncf %27 : vector<8x8x8xf32> to vector<8x8x8xbf16>
    %29 = vector.shape_cast %18 : vector<16x32xf32> to vector<16x4x8xf32>
    %30 = tpu.transpose %29, [1, 0, 2] : vector<16x4x8xf32> -> vector<4x16x8xf32>
    %31 = vector.shape_cast %30 : vector<4x16x8xf32> to vector<8x8x8xf32>
    %32 = arith.truncf %31 : vector<8x8x8xf32> to vector<8x8x8xbf16>
    "tpu.trace_start"() <{level = 10 : i32, message = "bqd,bkd->bqk"}> : () -> ()
    %cst_14 = arith.constant dense<0.000000e+00> : vector<8x8x8xf32>
    %33 = tpu.matmul %23, %28, %cst_14 {dimension_numbers = #tpu.dot_dimension_numbers<[2], [2], [1], [1], [0, 0, 0, 1, 1, 1], [0], [0]>} : vector<8x8x8xbf16>, vector<8x8x8xbf16>, vector<8x8x8xf32> -> vector<8x8x8xf32>
    "tpu.trace_stop"() : () -> ()
    %cst_15 = arith.constant dense<0xFF800000> : vector<8x8xf32>
    %34 = vector.multi_reduction <maximumf>, %33, %cst_15 [2] : vector<8x8x8xf32> to vector<8x8xf32>
    %35 = vector.shape_cast %34 : vector<8x8xf32> to vector<8x8x1xf32>
    %36 = vector.broadcast %35 : vector<8x8x1xf32> to vector<8x8x8xf32>
    %37 = arith.subf %33, %36 : vector<8x8x8xf32>
    %38 = math.exp %37 : vector<8x8x8xf32>
    %cst_16 = arith.constant dense<0.000000e+00> : vector<8x8xf32>
    %39 = vector.multi_reduction <add>, %38, %cst_16 [2] : vector<8x8x8xf32> to vector<8x8xf32>
    %40 = vector.shape_cast %39 : vector<8x8xf32> to vector<8x8x1xf32>
    %41 = tpu.reciprocal %40 {approx = true} : vector<8x8x1xf32> -> vector<8x8x1xf32>
    %42 = vector.broadcast %41 : vector<8x8x1xf32> to vector<8x8x8xf32>
    %43 = arith.mulf %38, %42 : vector<8x8x8xf32>
    %44 = arith.truncf %43 : vector<8x8x8xf32> to vector<8x8x8xbf16>
    "tpu.trace_start"() <{level = 10 : i32, message = "bqk,bkd->bqd"}> : () -> ()
    %cst_17 = arith.constant dense<0.000000e+00> : vector<8x8x8xf32>
    %45 = tpu.matmul %44, %32, %cst_17 {dimension_numbers = #tpu.dot_dimension_numbers<[2], [1], [1], [2], [0, 0, 0, 1, 1, 2], [0], [0]>} : vector<8x8x8xbf16>, vector<8x8x8xbf16>, vector<8x8x8xf32> -> vector<8x8x8xf32>
    "tpu.trace_stop"() : () -> ()
    %46 = vector.shape_cast %45 : vector<8x8x8xf32> to vector<4x16x8xf32>
    %47 = tpu.transpose %46, [1, 0, 2] : vector<4x16x8xf32> -> vector<16x4x8xf32>
    %48 = vector.shape_cast %47 : vector<16x4x8xf32> to vector<16x32xf32>
    %49 = arith.truncf %48 : vector<16x32xf32> to vector<16x32xbf16>
    %c0_18 = arith.constant 0 : index
    %c0_19 = arith.constant 0 : index
    %50 = vector.load %arg8[%c0_18, %c0_19] : memref<32x32xbf16, #tpu.memory_space<vmem>>, vector<32x32xbf16>
    %cst_20 = arith.constant dense<0.000000e+00> : vector<16x32xf32>
    %51 = tpu.matmul %49, %50, %cst_20 {dimension_numbers = #tpu.dot_dimension_numbers<[1], [0], [0], [1], [0, 0, 1, 1], [], []>} : vector<16x32xbf16>, vector<32x32xbf16>, vector<16x32xf32> -> vector<16x32xf32>
    %c0_21 = arith.constant 0 : index
    %c0_22 = arith.constant 0 : index
    %52 = vector.load %arg9[%c0_21, %c0_22] : memref<1x32xf32, #tpu.memory_space<vmem>>, vector<1x32xf32>
    %53 = vector.broadcast %52 : vector<1x32xf32> to vector<16x32xf32>
    %54 = arith.addf %51, %53 : vector<16x32xf32>
    %c1_i32 = arith.constant 1 : i32
    %55 = arith.cmpi eq, %arg1, %c1_i32 : i32
    %56 = arith.extui %55 : i1 to i32
    %c0_i32_23 = arith.constant 0 : i32
    %57 = arith.cmpi ne, %56, %c0_i32_23 : i32
    scf.if %57 {
      %128 = vector.shape_cast %43 : vector<8x8x8xf32> to vector<4x2x8x8xf32>
      %cst_61 = arith.constant dense<0.000000e+00> : vector<2x8x8xf32>
      %129 = vector.multi_reduction <add>, %128, %cst_61 [0] : vector<4x2x8x8xf32> to vector<2x8x8xf32>
      %cst_62 = arith.constant 2.500000e-01 : f32
      %130 = vector.broadcast %cst_62 : f32 to vector<2x8x8xf32>
      %131 = arith.mulf %129, %130 : vector<2x8x8xf32>
      %c0_63 = arith.constant 0 : index
      %c0_64 = arith.constant 0 : index
      %c0_65 = arith.constant 0 : index
      %132 = vector.load %arg19[%c0_63, %c0_64, %c0_65] : memref<2x8x8xf32, #tpu.memory_space<vmem>>, vector<2x8x8xf32>
      tpu.vector_store %arg19[%c0_63, %c0_64, %c0_65], %131 {strides = array<i32>} : memref<2x8x8xf32, #tpu.memory_space<vmem>>, vector<2x8x8xf32>,
    } else {
    }
    %58 = arith.addf %3, %54 : vector<16x32xf32>
    %cst_24 = arith.constant dense<0.000000e+00> : vector<16xf32>
    %59 = vector.multi_reduction <add>, %58, %cst_24 [1] : vector<16x32xf32> to vector<16xf32>
    %60 = vector.shape_cast %59 : vector<16xf32> to vector<16x1xf32>
    %cst_25 = arith.constant 3.200000e+01 : f32
    %61 = vector.broadcast %cst_25 : f32 to vector<16x1xf32>
    %62 = arith.divf %60, %61 : vector<16x1xf32>
    %63 = vector.broadcast %62 : vector<16x1xf32> to vector<16x32xf32>
    %64 = arith.subf %58, %63 : vector<16x32xf32>
    %65 = arith.mulf %64, %64 : vector<16x32xf32>
    %cst_26 = arith.constant dense<0.000000e+00> : vector<16xf32>
    %66 = vector.multi_reduction <add>, %65, %cst_26 [1] : vector<16x32xf32> to vector<16xf32>
    %67 = vector.shape_cast %66 : vector<16xf32> to vector<16x1xf32>
    %cst_27 = arith.constant 3.200000e+01 : f32
    %68 = vector.broadcast %cst_27 : f32 to vector<16x1xf32>
    %69 = arith.divf %67, %68 : vector<16x1xf32>
    %cst_28 = arith.constant 9.99999974E-6 : f32
    %70 = vector.broadcast %cst_28 : f32 to vector<16x1xf32>
    %71 = arith.addf %69, %70 : vector<16x1xf32>
    %72 = math.rsqrt %71 : vector<16x1xf32>
    %73 = vector.broadcast %72 : vector<16x1xf32> to vector<16x32xf32>
    %74 = arith.mulf %64, %73 : vector<16x32xf32>
    %c0_29 = arith.constant 0 : index
    %c0_30 = arith.constant 0 : index
    %75 = vector.load %arg10[%c0_29, %c0_30] : memref<1x32xf32, #tpu.memory_space<vmem>>, vector<1x32xf32>
    %76 = vector.broadcast %75 : vector<1x32xf32> to vector<16x32xf32>
    %77 = arith.mulf %74, %76 : vector<16x32xf32>
    %c0_31 = arith.constant 0 : index
    %c0_32 = arith.constant 0 : index
    %78 = vector.load %arg11[%c0_31, %c0_32] : memref<1x32xf32, #tpu.memory_space<vmem>>, vector<1x32xf32>
    %79 = vector.broadcast %78 : vector<1x32xf32> to vector<16x32xf32>
    %80 = arith.addf %77, %79 : vector<16x32xf32>
    %c0_33 = arith.constant 0 : index
    %c0_34 = arith.constant 0 : index
    %81 = vector.load %arg20[%c0_33, %c0_34] : memref<16x32xf32, #tpu.memory_space<vmem>>, vector<16x32xf32>
    tpu.vector_store %arg20[%c0_33, %c0_34], %80 {strides = array<i32>} : memref<16x32xf32, #tpu.memory_space<vmem>>, vector<16x32xf32>,
    %c0_i32_35 = arith.constant 0 : i32
    %c16_i32 = arith.constant 16 : i32
    %82 = arith.muli %c0_i32_35, %c16_i32 : i32
    %83 = tpu.assume_multiple %82, 8 : i32
    %84 = arith.index_cast %83 : i32 to index
    %c0_36 = arith.constant 0 : index
    %85 = vector.load %arg20[%84, %c0_36] : memref<16x32xf32, #tpu.memory_space<vmem>>, vector<16x32xf32>
    %86 = arith.truncf %85 : vector<16x32xf32> to vector<16x32xbf16>
    %c0_37 = arith.constant 0 : index
    %c0_38 = arith.constant 0 : index
    %87 = vector.load %arg12[%c0_37, %c0_38] : memref<32x64xbf16, #tpu.memory_space<vmem>>, vector<32x64xbf16>
    %cst_39 = arith.constant dense<0.000000e+00> : vector<16x64xf32>
    %88 = tpu.matmul %86, %87, %cst_39 {dimension_numbers = #tpu.dot_dimension_numbers<[1], [0], [0], [1], [0, 0, 1, 1], [], []>} : vector<16x32xbf16>, vector<32x64xbf16>, vector<16x64xf32> -> vector<16x64xf32>
    %c0_40 = arith.constant 0 : index
    %c0_41 = arith.constant 0 : index
    %89 = vector.load %arg13[%c0_40, %c0_41] : memref<1x64xf32, #tpu.memory_space<vmem>>, vector<1x64xf32>
    %90 = vector.broadcast %89 : vector<1x64xf32> to vector<16x64xf32>
    %91 = arith.addf %88, %90 : vector<16x64xf32>
    %cst_42 = arith.constant 0.000000e+00 : f32
    %92 = vector.broadcast %cst_42 : f32 to vector<16x64xf32>
    %93 = arith.maximumf %91, %92 : vector<16x64xf32>
    %94 = arith.truncf %93 : vector<16x64xf32> to vector<16x64xbf16>
    %c0_43 = arith.constant 0 : index
    %c0_44 = arith.constant 0 : index
    %95 = vector.load %arg14[%c0_43, %c0_44] : memref<64x32xbf16, #tpu.memory_space<vmem>>, vector<64x32xbf16>
    %cst_45 = arith.constant dense<0.000000e+00> : vector<16x32xf32>
    %96 = tpu.matmul %94, %95, %cst_45 {dimension_numbers = #tpu.dot_dimension_numbers<[1], [0], [0], [1], [0, 0, 1, 1], [], []>} : vector<16x64xbf16>, vector<64x32xbf16>, vector<16x32xf32> -> vector<16x32xf32>
    %c0_46 = arith.constant 0 : index
    %c0_47 = arith.constant 0 : index
    %97 = vector.load %arg15[%c0_46, %c0_47] : memref<1x32xf32, #tpu.memory_space<vmem>>, vector<1x32xf32>
    %98 = vector.broadcast %97 : vector<1x32xf32> to vector<16x32xf32>
    %99 = arith.addf %96, %98 : vector<16x32xf32>
    %100 = arith.addf %85, %99 : vector<16x32xf32>
    %cst_48 = arith.constant dense<0.000000e+00> : vector<16xf32>
    %101 = vector.multi_reduction <add>, %100, %cst_48 [1] : vector<16x32xf32> to vector<16xf32>
    %102 = vector.shape_cast %101 : vector<16xf32> to vector<16x1xf32>
    %cst_49 = arith.constant 3.200000e+01 : f32
    %103 = vector.broadcast %cst_49 : f32 to vector<16x1xf32>
    %104 = arith.divf %102, %103 : vector<16x1xf32>
    %105 = vector.broadcast %104 : vector<16x1xf32> to vector<16x32xf32>
    %106 = arith.subf %100, %105 : vector<16x32xf32>
    %107 = arith.mulf %106, %106 : vector<16x32xf32>
    %cst_50 = arith.constant dense<0.000000e+00> : vector<16xf32>
    %108 = vector.multi_reduction <add>, %107, %cst_50 [1] : vector<16x32xf32> to vector<16xf32>
    %109 = vector.shape_cast %108 : vector<16xf32> to vector<16x1xf32>
    %cst_51 = arith.constant 3.200000e+01 : f32
    %110 = vector.broadcast %cst_51 : f32 to vector<16x1xf32>
    %111 = arith.divf %109, %110 : vector<16x1xf32>
    %cst_52 = arith.constant 9.99999974E-6 : f32
    %112 = vector.broadcast %cst_52 : f32 to vector<16x1xf32>
    %113 = arith.addf %111, %112 : vector<16x1xf32>
    %114 = math.rsqrt %113 : vector<16x1xf32>
    %115 = vector.broadcast %114 : vector<16x1xf32> to vector<16x32xf32>
    %116 = arith.mulf %106, %115 : vector<16x32xf32>
    %c0_53 = arith.constant 0 : index
    %c0_54 = arith.constant 0 : index
    %117 = vector.load %arg16[%c0_53, %c0_54] : memref<1x32xf32, #tpu.memory_space<vmem>>, vector<1x32xf32>
    %118 = vector.broadcast %117 : vector<1x32xf32> to vector<16x32xf32>
    %119 = arith.mulf %116, %118 : vector<16x32xf32>
    %c0_55 = arith.constant 0 : index
    %c0_56 = arith.constant 0 : index
    %120 = vector.load %arg17[%c0_55, %c0_56] : memref<1x32xf32, #tpu.memory_space<vmem>>, vector<1x32xf32>
    %121 = vector.broadcast %120 : vector<1x32xf32> to vector<16x32xf32>
    %122 = arith.addf %119, %121 : vector<16x32xf32>
    %123 = arith.index_cast %83 : i32 to index
    %c0_57 = arith.constant 0 : index
    %124 = vector.load %arg20[%123, %c0_57] : memref<16x32xf32, #tpu.memory_space<vmem>>, vector<16x32xf32>
    tpu.vector_store %arg20[%123, %c0_57], %122 {strides = array<i32>} : memref<16x32xf32, #tpu.memory_space<vmem>>, vector<16x32xf32>,
    %c1_i32_58 = arith.constant 1 : i32
    %c1_i32_59 = arith.constant 1 : i32
    %125 = arith.cmpi eq, %arg1, %c1_i32_59 : i32
    %126 = arith.extui %125 : i1 to i32
    %c0_i32_60 = arith.constant 0 : i32
    %127 = arith.cmpi ne, %126, %c0_i32_60 : i32
    scf.if %127 {
      %c0_61 = arith.constant 0 : index
      %c0_62 = arith.constant 0 : index
      %128 = vector.load %arg20[%c0_61, %c0_62] : memref<16x32xf32, #tpu.memory_space<vmem>>, vector<16x32xf32>
      %129 = vector.shape_cast %128 : vector<16x32xf32> to vector<2x8x32xf32>
      %c0_63 = arith.constant 0 : index
      %c0_64 = arith.constant 0 : index
      %c0_65 = arith.constant 0 : index
      %130 = vector.load %arg18[%c0_63, %c0_64, %c0_65] : memref<2x8x32xf32, #tpu.memory_space<vmem>>, vector<2x8x32xf32>
      tpu.vector_store %arg18[%c0_63, %c0_64, %c0_65], %129 {strides = array<i32>} : memref<2x8x32xf32, #tpu.memory_space<vmem>>, vector<2x8x32xf32>,
    } else {
    }
    return
  }
  func.func @transform_0(%arg0: i32, %arg1: i32) -> (i32, i32, i32) {
    %c0_i32 = arith.constant 0 : i32
    %c0_i32_0 = arith.constant 0 : i32
    %c0_i32_1 = arith.constant 0 : i32
    return %arg0, %c0_i32, %c0_i32_0 : i32, i32, i32
  }
  func.func @transform_1(%arg0: i32, %arg1: i32) -> (i32, i32, i32) {
    %c0_i32 = arith.constant 0 : i32
    %c0_i32_0 = arith.constant 0 : i32
    %c0_i32_1 = arith.constant 0 : i32
    return %arg0, %c0_i32, %c0_i32_0 : i32, i32, i32
  }
  func.func @transform_2(%arg0: i32, %arg1: i32) -> (i32, i32) {
    %c0_i32 = arith.constant 0 : i32
    %c0_i32_0 = arith.constant 0 : i32
    %c0_i32_1 = arith.constant 0 : i32
    return %c0_i32, %c0_i32_0 : i32, i32
  }
  func.func @transform_3(%arg0: i32, %arg1: i32) -> (i32, i32) {
    %c0_i32 = arith.constant 0 : i32
    %c0_i32_0 = arith.constant 0 : i32
    %c0_i32_1 = arith.constant 0 : i32
    return %c0_i32, %c0_i32_0 : i32, i32
  }
  func.func @transform_4(%arg0: i32, %arg1: i32) -> (i32, i32) {
    %c0_i32 = arith.constant 0 : i32
    %c0_i32_0 = arith.constant 0 : i32
    %c0_i32_1 = arith.constant 0 : i32
    return %c0_i32, %c0_i32_0 : i32, i32
  }
  func.func @transform_5(%arg0: i32, %arg1: i32) -> (i32, i32) {
    %c0_i32 = arith.constant 0 : i32
    %c0_i32_0 = arith.constant 0 : i32
    %c0_i32_1 = arith.constant 0 : i32
    return %c0_i32, %c0_i32_0 : i32, i32
  }
  func.func @transform_6(%arg0: i32, %arg1: i32) -> (i32, i32) {
    %c0_i32 = arith.constant 0 : i32
    %c0_i32_0 = arith.constant 0 : i32
    %c0_i32_1 = arith.constant 0 : i32
    return %c0_i32, %c0_i32_0 : i32, i32
  }
  func.func @transform_7(%arg0: i32, %arg1: i32) -> (i32, i32) {
    %c0_i32 = arith.constant 0 : i32
    %c0_i32_0 = arith.constant 0 : i32
    %c0_i32_1 = arith.constant 0 : i32
    return %c0_i32, %c0_i32_0 : i32, i32
  }
  func.func @transform_8(%arg0: i32, %arg1: i32) -> (i32, i32) {
    %c0_i32 = arith.constant 0 : i32
    %c0_i32_0 = arith.constant 0 : i32
    %c0_i32_1 = arith.constant 0 : i32
    return %c0_i32, %c0_i32_0 : i32, i32
  }
  func.func @transform_9(%arg0: i32, %arg1: i32) -> (i32, i32) {
    %c0_i32 = arith.constant 0 : i32
    %c0_i32_0 = arith.constant 0 : i32
    %c0_i32_1 = arith.constant 0 : i32
    return %c0_i32, %c0_i32_0 : i32, i32
  }
  func.func @transform_10(%arg0: i32, %arg1: i32) -> (i32, i32) {
    %c0_i32 = arith.constant 0 : i32
    %c0_i32_0 = arith.constant 0 : i32
    %c0_i32_1 = arith.constant 0 : i32
    return %c0_i32, %c0_i32_0 : i32, i32
  }
  func.func @transform_11(%arg0: i32, %arg1: i32) -> (i32, i32) {
    %c0_i32 = arith.constant 0 : i32
    %c0_i32_0 = arith.constant 0 : i32
    %c0_i32_1 = arith.constant 0 : i32
    return %c0_i32, %c0_i32_0 : i32, i32
  }
  func.func @transform_12(%arg0: i32, %arg1: i32) -> (i32, i32) {
    %c0_i32 = arith.constant 0 : i32
    %c0_i32_0 = arith.constant 0 : i32
    %c0_i32_1 = arith.constant 0 : i32
    return %c0_i32, %c0_i32_0 : i32, i32
  }
  func.func @transform_13(%arg0: i32, %arg1: i32) -> (i32, i32) {
    %c0_i32 = arith.constant 0 : i32
    %c0_i32_0 = arith.constant 0 : i32
    %c0_i32_1 = arith.constant 0 : i32
    return %c0_i32, %c0_i32_0 : i32, i32
  }
  func.func @transform_14(%arg0: i32, %arg1: i32) -> (i32, i32) {
    %c0_i32 = arith.constant 0 : i32
    %c0_i32_0 = arith.constant 0 : i32
    %c0_i32_1 = arith.constant 0 : i32
    return %c0_i32, %c0_i32_0 : i32, i32
  }
  func.func @transform_15(%arg0: i32, %arg1: i32) -> (i32, i32) {
    %c0_i32 = arith.constant 0 : i32
    %c0_i32_0 = arith.constant 0 : i32
    %c0_i32_1 = arith.constant 0 : i32
    return %c0_i32, %c0_i32_0 : i32, i32
  }
  func.func @transform_16(%arg0: i32, %arg1: i32) -> (i32, i32, i32) {
    %c0_i32 = arith.constant 0 : i32
    %c0_i32_0 = arith.constant 0 : i32
    %c0_i32_1 = arith.constant 0 : i32
    return %arg0, %c0_i32, %c0_i32_0 : i32, i32, i32
  }
  func.func @transform_17(%arg0: i32, %arg1: i32) -> (i32, i32, i32) {
    %c0_i32 = arith.constant 0 : i32
    %c0_i32_0 = arith.constant 0 : i32
    %c0_i32_1 = arith.constant 0 : i32
    return %arg0, %c0_i32, %c0_i32_0 : i32, i32, i32
  }
}

</mosaic_0001>

<bundles_post_ra>
// kernel: tpu_custom_call.1
= control target key start
LH: loop header
LB: loop body
LE: loop exit
PB: predicated region body
PF: predicated region fallthrough
CT: control target
= control target key end

     0   :  { %s4874_s0 = inlined_call_operand.vmem [shape: f32[2,8,32], index: 0, kind: input, shape index: {}]   ;;  %s4875_s1 = inlined_call_operand.vmem [shape: f32[2,8,32], index: 1, kind: input, shape index: {}]   ;;  %s4876_s2 = inlined_call_operand.vmem [shape: bf16[32,64], index: 2, kind: input, shape index: {}]   ;;  %s4877_s3 = inlined_call_operand.vmem [shape: f32[1,64], index: 3, kind: input, shape index: {}]   ;;  %s4878_s4 = inlined_call_operand.hbm [shape: bf16[32,32], index: 4, kind: input, shape index: {}]   ;;  %s4879_s5 = inlined_call_operand.vmem [shape: f32[1,32], index: 5, kind: input, shape index: {}]   ;;  %s4880_s6 = inlined_call_operand.hbm [shape: bf16[32,32], index: 6, kind: input, shape index: {}]   ;;  %s4881_s7 = inlined_call_operand.hbm [shape: f32[1,32], index: 7, kind: input, shape index: {}]   ;;  %s4882_s8 = inlined_call_operand.hbm [shape: f32[1,32], index: 8, kind: input, shape index: {}]   ;;  %s4883_s9 = inlined_call_operand.hbm [shape: f32[1,32], index: 9, kind: input, shape index: {}]   ;;  %s4884_s10 = inlined_call_operand.vmem [shape: bf16[32,64], index: 10, kind: input, shape index: {}]   ;;  %s4885_s11 = inlined_call_operand.vmem [shape: f32[1,64], index: 11, kind: input, shape index: {}]   ;;  %s4886_s12 = inlined_call_operand.vmem [shape: bf16[64,32], index: 12, kind: input, shape index: {}]   ;;  %s4887_s13 = inlined_call_operand.vmem [shape: f32[1,32], index: 13, kind: input, shape index: {}]   ;;  %s4888_s14 = inlined_call_operand.vmem [shape: f32[1,32], index: 14, kind: input, shape index: {}]   ;;  %s4889_s15 = inlined_call_operand.vmem [shape: f32[1,32], index: 15, kind: input, shape index: {}]   ;;  %s4890_s16 = inlined_call_operand.hbm [shape: f32[2,8,32], index: 16, kind: output, shape index: {0}]   ;;  %s4891_s17 = inlined_call_operand.hbm [shape: f32[2,8,8], index: 17, kind: output, shape index: {1}]  }
   0x1   :  { %4903 = sst [smem:[#allocation21_spill]] %s4874_s0 }
   0x2   :  { %4904 = sst [smem:[#allocation22_spill]] %s4875_s1 }
   0x3   :  { %4905 = sst [smem:[#allocation23_spill]] %s4880_s6 }
   0x4   :  { %4906 = sst [smem:[#allocation24_spill]] %s4888_s14 }
   0x5   :  { %4907 = sst [smem:[#allocation25_spill]] %s4889_s15 }
   0x6   :  { %4908 = sst [smem:[#allocation26_spill]] %s4890_s16 }
   0x7   :  { %4909 = sst [smem:[#allocation27_spill]] %s4891_s17 }
   0x8   :  { %23 = vsyncpa [#allocation4], 0 }
   0x9   :  { %24 = vsyncpa [#allocation7], 0 }
   0xa   :  { %25 = vsyncpa [#allocation10], 0 }
   0xb   :  { %26 = vsyncpa [#allocation5], 0 }
   0xc   :  { %27 = vsyncpa [#allocation14], 0  ;;  %s4142_s24 = smov 0   ;;  %s4144_s25 = smov 0  }
   0xd   :  { %s4146_s26 = smov 0  }
   0xe LB: > { %4910 = sst [smem:[#allocation20_spill]] %s4029_s26  ;;  %s4894_s27 = sadd.s32 4294967295, %s4029_s26   ;;  %s4029_s26 = sphi %s4146_s26, %s33_s26   ;;  %s4025_s25 = sphi %s4144_s25, %s4933_s25   ;;  %s4021_s24 = sphi %s4142_s24, %s4932_s24  }
   0xf   : > { %p3355_p0 = scmp.ge.s32.totalorder %s4029_s26, 1  ;;  %p448_p1 = scmp.lt.s32.totalorder %s4029_s26, 3 }
  0x10   : > { %p4162_p2 = scmp.eq.s32.totalorder %s4894_s27, 0  ;;  %s4031_s0 = smov [#allocation6]  }
  0x11   : > { %p4166_p3 = pnand %p3355_p0, %p448_p1  ;;  %s500_s30 = sshll.u32 %s4031_s0, 4  ;;  %s4170_s30 = int_to_ptr.vmem [resolvable:$true] %s500_s30 }
  0x12   : > { %s4911_s28 = scalar_select %p4162_p2, 1, 0 }
  0x13   : > { %s4912_s29 = scalar_select %p4166_p3, 1, 0 }
  0x14   : > { %p3653_p4 = pneg %p4166_p3  ;;  %s4032_s18 = smov [#allocation9]  }
  0x15   : > { %s525_s19 = sshll.u32 %s4032_s18, 4  ;;  %s4914_s6 = sld [smem:[#allocation23_spill]]  ;;  %s4174_s19 = int_to_ptr.vmem [resolvable:$true] %s525_s19 }
  0x16   : > { %p4178_p5 = pnand %p4162_p2, %p3653_p4 }
  0x18   : > { %p4191_p7 = pneg %p4178_p5 }
  0x1b   : > { %s3795_s23 = scalar_lea.hbm %s4914_s6, 256 }
  0x1c   : > { %p3796_p6 = scmp.ne.s32.totalorder %s4914_s6, %s3795_s23  ;;  %p3802_p10 = scmp.lt.u32.totalorder %s3795_s23, %s4914_s6 }
  0x1e   : > { %p3798_p8 = pnand %p4191_p7, %p3796_p6 }
  0x20   : > { %p3799_p9 = pneg %p3798_p8 }
  0x22   : > { %p3804_p11 = pnand %p3802_p10, %p3799_p9 }
  0x24   : > { %3807 = shalt.err (!%p3804_p11)
}
  0x25   : > { %s3808_s27 = scalar_lea.vmem %s4170_s30, 256  ;;  %p3816_p1 = scmp.lt.s32.totalorder %s4170_s30, %s4170_s30 }
  0x26   : > { %p3809_p12 = scmp.ne.s32.totalorder %s4170_s30, %s3808_s27  ;;  %p3817_p4 = scmp.lt.s32.totalorder %s3808_s27, %s3808_s27 }
  0x28   : > { %p3811_p13 = pnand %p3809_p12, %p4191_p7  ;;  %p3818_p6 = por %p3817_p4, %p3816_p1 }
  0x2a   : > { %p3812_p0 = pneg %p3811_p13 }
  0x2c   : > { %p3819_p8 = pnand %p3818_p6, %p3812_p0 }
  0x2e   : > { %3822 = shalt.err (!%p3819_p8)
}
  0x2f   : > { %s4898_s21 = smov 64   ;;  %s4899_s16 = smov 4  }
  0x30   : > { %3659 = dma.hbm_to_vmem [thread:$0]  (!%p4178_p5), %s4914_s6, 256, %s4170_s30, [#allocation7], %s4898_s21, %s4898_s21, %s4899_s16  }
  0x31   : > { %s3823_s27 = scalar_lea.hbm %s4882_s8, 16 }
  0x32   : > { %p3824_p9 = scmp.ne.s32.totalorder %s4882_s8, %s3823_s27  ;;  %p3830_p12 = scmp.lt.u32.totalorder %s3823_s27, %s4882_s8 }
  0x34   : > { %p3826_p10 = pnand %p3824_p9, %p4191_p7 }
  0x36   : > { %p3827_p11 = pneg %p3826_p10 }
  0x38   : > { %p3832_p13 = pnand %p3830_p12, %p3827_p11 }
  0x3a   : > { %3835 = shalt.err (!%p3832_p13)
}
  0x3b   : > { %s3836_s30 = scalar_lea.vmem %s4174_s19, 16  ;;  %s3843_s26 = scalar_lea.vmem %s4174_s19, 32 }
  0x3c   : > { %p3837_p0 = scmp.ne.s32.totalorder %s4174_s19, %s3836_s30  ;;  %p3844_p6 = scmp.lt.s32.totalorder %s4174_s19, %s4174_s19 }
  0x3d   : > { %p3845_p8 = scmp.lt.s32.totalorder %s3843_s26, %s3836_s30 }
  0x3e   : > { %p3839_p1 = pnand %p3837_p0, %p4191_p7 }
  0x3f   : > { %p3846_p9 = por %p3845_p8, %p3844_p6 }
  0x40   : > { %p3840_p4 = pneg %p3839_p1 }
  0x42   : > { %p3847_p10 = pnand %p3846_p9, %p3840_p4 }
  0x44   : > { %3850 = shalt.err (!%p3847_p10)
}
  0x45   : > { %3665 = dma.hbm_to_vmem [thread:$0]  (!%p4178_p5), %s4882_s8, 16, %s4174_s19, [#allocation10]  }
  0x46   : > { %s4916_s20 = sadd.s32 1, %s4025_s25  ;;  %s4035_s17 = smov [#allocation3]  }
  0x47   : > { %p43_p11 = scmp.ge.s32.totalorder %s4916_s20, 2  ;;  %s484_s22 = sshll.u32 %s4035_s17, 4  ;;  %s485_s22 = int_to_ptr.vmem [resolvable:$true] %s484_s22 }
  0x48   : > { %s4917_s23 = smov %s4916_s20  ;;  %s4036_s0 = smov [#allocation8]  }
  0x49   : > { %s4935_s23 = smov (%p43_p11, %s4917_s23), 0  ;;  %s514_s27 = sshll.u32 %s4036_s0, 4  ;;  %s515_s27 = int_to_ptr.vmem [resolvable:$true] %s514_s27 }
  0x4a   : > { %s3851_s21 = scalar_lea.hbm %s4878_s4, 256 }
  0x4b   : > { %p3852_p12 = scmp.ne.s32.totalorder %s4878_s4, %s3851_s21  ;;  %p3858_p1 = scmp.lt.u32.totalorder %s3851_s21, %s4878_s4 }
  0x4d   : > { %p3854_p13 = pnand %p3852_p12, %p4191_p7 }
  0x4f   : > { %p3855_p0 = pneg %p3854_p13 }
  0x51   : > { %p3860_p4 = pnand %p3858_p1, %p3855_p0 }
  0x53   : > { %3863 = shalt.err (!%p3860_p4)
}
  0x54   : > { %s3864_s20 = scalar_lea.vmem %s485_s22, 256  ;;  %p3872_p10 = scmp.lt.s32.totalorder %s485_s22, %s485_s22 }
  0x55   : > { %p3865_p6 = scmp.ne.s32.totalorder %s485_s22, %s3864_s20  ;;  %p3873_p11 = scmp.lt.s32.totalorder %s3864_s20, %s3864_s20 }
  0x57   : > { %p3867_p8 = pnand %p3865_p6, %p4191_p7  ;;  %p3874_p2 = por %p3873_p11, %p3872_p10 }
  0x59   : > { %p3868_p9 = pneg %p3867_p8 }
  0x5b   : > { %p3875_p3 = pnand %p3874_p2, %p3868_p9 }
  0x5d   : > { %3878 = shalt.err (!%p3875_p3)
}
  0x5e   : > { %s4918_s16 = smov 4   ;;  %s4919_s17 = smov 64  }
  0x5f   : > { %3656 = dma.hbm_to_vmem [thread:$0]  (!%p4178_p5), %s4878_s4, 256, %s485_s22, [#allocation4], %s4919_s17, %s4919_s17, %s4918_s16  }
  0x60   : > { %s3879_s14 = scalar_lea.hbm %s4881_s7, 16 }
  0x61   : > { %p3880_p2 = scmp.ne.s32.totalorder %s4881_s7, %s3879_s14  ;;  %p3886_p13 = scmp.lt.u32.totalorder %s3879_s14, %s4881_s7 }
  0x63   : > { %p3882_p3 = pnand %p3880_p2, %p4191_p7 }
  0x65   : > { %p3883_p12 = pneg %p3882_p3 }
  0x67   : > { %p3888_p0 = pnand %p3886_p13, %p3883_p12 }
  0x69   : > { %3891 = shalt.err (!%p3888_p0)
}
  0x6a   : > { %s3892_s0 = scalar_lea.vmem %s515_s27, 16  ;;  %s3899_s22 = scalar_lea.vmem %s515_s27, 32 }
  0x6b   : > { %p3893_p1 = scmp.ne.s32.totalorder %s515_s27, %s3892_s0  ;;  %p3900_p8 = scmp.lt.s32.totalorder %s515_s27, %s515_s27 }
  0x6c   : > { %p3901_p9 = scmp.lt.s32.totalorder %s3899_s22, %s3892_s0 }
  0x6d   : > { %p3895_p4 = pnand %p3893_p1, %p4191_p7 }
  0x6e   : > { %p3902_p10 = por %p3901_p9, %p3900_p8 }
  0x6f   : > { %p3896_p6 = pneg %p3895_p4 }
  0x71   : > { %p3903_p11 = pnand %p3902_p10, %p3896_p6 }
  0x73   : > { %3906 = shalt.err (!%p3903_p11)
}
  0x74   : > { %3662 = dma.hbm_to_vmem [thread:$0]  (!%p4178_p5), %s4881_s7, 16, %s515_s27, [#allocation7]  }
  0x75   : > { %s4037_s6 = smov [#allocation11]   ;;  %s3907_s14 = scalar_lea.hbm %s4883_s9, 16 }
  0x76   : > { %s536_s21 = sshll.u32 %s4037_s6, 4  ;;  %p3908_p2 = scmp.ne.s32.totalorder %s4883_s9, %s3907_s14  ;;  %s537_s21 = int_to_ptr.vmem [resolvable:$true] %s536_s21 }
  0x77   : > { %p3914_p13 = scmp.lt.u32.totalorder %s3907_s14, %s4883_s9 }
  0x78   : > { %p3910_p3 = pnand %p3908_p2, %p4191_p7 }
  0x7a   : > { %p3911_p12 = pneg %p3910_p3 }
  0x7c   : > { %p3916_p0 = pnand %p3914_p13, %p3911_p12 }
  0x7e   : > { %3919 = shalt.err (!%p3916_p0)
}
  0x7f   : > { %s3920_s27 = scalar_lea.vmem %s537_s21, 16  ;;  %s3927_s22 = scalar_lea.vmem %s537_s21, 32 }
  0x80   : > { %p3921_p1 = scmp.ne.s32.totalorder %s537_s21, %s3920_s27  ;;  %p3928_p8 = scmp.lt.s32.totalorder %s537_s21, %s537_s21 }
  0x81   : > { %p3929_p9 = scmp.lt.s32.totalorder %s3927_s22, %s3920_s27 }
  0x82   : > { %p3923_p4 = pnand %p3921_p1, %p4191_p7 }
  0x83   : > { %p3930_p10 = por %p3929_p9, %p3928_p8 }
  0x84   : > { %p3924_p6 = pneg %p3923_p4 }
  0x86   : > { %p3931_p11 = pnand %p3930_p10, %p3924_p6 }
  0x88   : > { %3934 = shalt.err (!%p3931_p11)
}
  0x89   : > { %3668 = dma.hbm_to_vmem [thread:$0]  (!%p4178_p5), %s4883_s9, 16, %s537_s21, [#allocation10]  }
  0x8a   : > { %p4920_p2 = scmp.ne.s32.totalorder %s4912_s29, 0 }
  0x8b   : > { %p4921_p3 = scmp.ne.s32.totalorder (!%p4920_p2), %s4911_s28, 0 }
  0x8c   : > { %567 = sbr.rel (%p4920_p2) target bundleno = 2979 (0xba3), region = 84 }
  0x93   : > { %4000 = dma.done.wait (%p4921_p3), [#allocation4], 256  }
  0x94   : > { %4002 = vsyncadd (%p4921_p3), [#allocation4], 4294967040 }
  0x95   : > { %4004 = dma.done.wait (%p4921_p3), [#allocation7], 272  }
  0x96   : > { %4006 = vsyncadd (%p4921_p3), [#allocation7], 4294967024 }
  0x97   : > { %4008 = dma.done.wait (%p4921_p3), [#allocation10], 32  }
  0x98   : > { %4010 = vsyncadd (%p4921_p3), [#allocation10], 4294967264  ;;  %p3369_p5 = scmp.ne.s32.totalorder %s4021_s24, 0 }
  0x99   : > { %s4922_s18 = sld [smem:[#allocation21_spill]] (!%p3369_p5)  ;;  %vm656_vm0 = vcmask (!%p3369_p5), 261120  }
  0x9a   : > { %653 = sbr.rel (%p3369_p5) target bundleno = 161 (0xa1), region = 108 }
  0x9f   : > { %v654_v0 = vld [vmem:[%s4922_s18] sm:$0xff] (!%p3369_p5)  ;;  %v655_v1 = vld [vmem:[%s4922_s18 + $0x8] sm:$0xff] (!%p3369_p5) }
  0xa0   : > { %657 = vst.msk [vmem:[#allocation2] sm:$0xff] (!%p3369_p5), %vm656_vm0, %v654_v0  ;;  %658 = vst.msk [vmem:[#allocation2 + $0x8] sm:$0xff] (!%p3369_p5), %vm656_vm0, %v655_v1 }
  0xa1 PF: > { %v3743_v2 = vld [vmem:[%s4876_s2] sm:$0xff]   ;;  %v4038_v3 = vmov 0.0   ;;  %v3744_v4 = vld [vmem:[%s4876_s2 + $0x8] sm:$0xff]   ;;  %vm4039_vm1 = vmmov 0   ;;  %s4923_s20 = sld [smem:[#allocation22_spill]]  ;;  %vm689_vm2 = vcmask 261120   ;;  %v827_v24 = vlaneseq }
  0xa2   : > { %3485 = vmatprep.subr.bf16.mxu1 %v4038_v3  ;;  %3501 = vmatprep.subr.bf16.mxu0 %v4038_v3  ;;  %v3370_v13 = vld [vmem:[%s4877_s3] ss:$0 sm:$0xff]  ;;  %s4040_s17 = smov 112   ;;  %s4041_s29 = smov 120   ;;  %v3745_v20 = vld [vmem:[#allocation3] sm:$0xff]   ;;  %v3746_v21 = vld [vmem:[#allocation3 + $0x8] sm:$0xff]  }
  0xa3   : > { %3486 = vmatpush3.bf16.msra.mxu1 %v3743_v2  ;;  %3489 = vmatprep.mubr.msk.bf16.mxu1 %vm4039_vm1, %v4038_v3  ;;  %s4042_s1 = smov 104   ;;  %s4043_s6 = smov 96   ;;  %v4044_v22 = vmov 1983009808   ;;  %v4045_v27 = vmov 1934713408  }
  0xa4   : > { %3487 = vmatprep.subr.bf16.mxu1 %v4038_v3  ;;  %3503 = vmatprep.mubr.msk.bf16.mxu0 %vm4039_vm1, %v4038_v3  ;;  %v825_v23 = vunpack.c.l.s4 %v4044_v22  ;;  %v857_v28 = vunpack.c.l.s4 %v4045_v27  ;;  %v828_v30 = vshrl.u32 %v827_v24, 7  ;;  %vm1706_vm3 = vcmask 64512   ;;  %s4046_s26 = smov 16   ;;  %s4047_s28 = smov 8  }
  0xa5   : > { %vm2174_vm4 = vcmask 1043456   ;;  %s4048_s14 = smov 24   ;;  %vm2838_vm5 = vcmask 130048   ;;  %vm2841_vm6 = vcmask 195584   ;;  %p3414_p7 = scmp.ne.s32.totalorder %s4021_s24, 1 }
  0xa6   : > { %v826_v29 = vunpack.c.0.s8 %v825_v23  ;;  %v858_v35 = vunpack.c.0.s8 %v857_v28 }
  0xa7   : > { %v4333_v5 = vld [vmem:[#allocation2] sm:$0xff]  ;;  %v4335_v6 = vld [vmem:[#allocation2 + $0x8] sm:$0xff]  ;;  %3488 = vmatpush3.bf16.msra.mxu1 %v3744_v4 }
  0xa8   : > { %v661_v7 = vld [vmem:[%s4923_s20] sm:$0xff]  ;;  %v662_v8 = vld [vmem:[%s4923_s20 + $0x8] sm:$0xff]  ;;  %v734_v10 = vpack.c.bf16 %v4335_v6, %v4333_v5  ;;  %3493 = vmatprep.subr.bf16.mxu1 %v4038_v3  ;;  %v4373_v36 = vsub.s32 %v826_v29, %v828_v30  ;;  %v4378_v47 = vsub.s32 %v858_v35, %v828_v30 }
  0xa9   : > { %v663_v9 = vadd.f32 %v661_v7, %v4333_v5  ;;  %v664_v11 = vadd.f32 %v662_v8, %v4335_v6 }
  0xab   : > { %v665_v12 = vpack.c.bf16 %v664_v11, %v663_v9 }
  0xad   : > { %3490 = vmatmul.mubr.msk.bf16.vlgmr.msra.gmra.mrb[0].mxu1 %vm689_vm2, %v665_v12 }
  0xae   : > { %3497 = vmatprep.mubr.msk.bf16.mxu1 %vm4039_vm1, %v4038_v3  ;;  %3494 = vmatpush3.bf16.msra.mxu1 %v3745_v20 }
  0xaf   : > { %3495 = vmatprep.subr.bf16.mxu1 %v4038_v3 }
  0xb2   : > { %3496 = vmatpush3.bf16.msra.mxu1 %v3746_v21 }
  0xb3   : > { %3507 = vmatprep.subr.bf16.mxu1 %v4038_v3 }
  0xb5   : > { %3498 = vmatmul.mubr.msk.bf16.vlgmr.msra.gmra.mrb[4].mxu1 %vm689_vm2, %v734_v10 }
  0xb6   : > { %3509 = vmatprep.mubr.msk.bf16.mxu1 %vm4039_vm1, %v4038_v3 }
 0x180   : > { %v727_v14 = vpop.f32.mrb[0].mxu1 }
 0x181   : > { %v728_v15 = vadd.f32 %v3370_v13, %v727_v14  ;;  %v3491_v16 = vpop.f32.mrb[1].mxu1 }
 0x182   : > { %v730_v17 = vpop.f32.mrb[2].mxu1 }
 0x183   : > { %810 = vrot.lane.b32.xlu1 %v728_v15, %s4040_s17  ;;  %804 = vrot.lane.b32.xlu0 %v728_v15, %s4041_s29  ;;  %v3492_v18 = vpop.f32.mrb[3].mxu1  ;;  %v731_v19 = vadd.f32 %v3370_v13, %v730_v17 }
 0x187   : > { %812 = vrot.lane.b32.xlu1 %v731_v19, %s4040_s17  ;;  %806 = vrot.lane.b32.xlu0 %v731_v19, %s4041_s29 }
 0x18b   : > { %818 = vrot.lane.b32.xlu1 %v731_v19, %s4042_s1  ;;  %816 = vrot.lane.b32.xlu0 %v728_v15, %s4042_s1 }
 0x18f   : > { %1104 = vrot.lane.b32.xlu1 %v731_v19, %s4043_s6  ;;  %1102 = vrot.lane.b32.xlu0 %v728_v15, %s4043_s6 }
 0x1f5   : > { %v811_v25 = vpop.permute.xlu1 %810  ;;  %v805_v26 = vpop.permute.xlu0 %804 }
 0x1f6   : > { %1106 = vrot.lane.b32.xlu0 %v805_v26, %s4043_s6  ;;  %v822_v37 = vcombine.low %v728_v15, %v811_v25  ;;  %v823_v38 = vcombine.high %v728_v15, %v811_v25 }
 0x1f8   : > { %v830_v52 = vrot.slane %v822_v37, %v4373_v36  ;;  %v837_v53 = vrot.slane %v823_v38, %v4373_v36 }
 0x1f9   : > { %v813_v31 = vpop.permute.xlu1 %812  ;;  %v807_v32 = vpop.permute.xlu0 %806 }
 0x1fa   : > { %1110 = vrot.lane.b32.xlu0 %v811_v25, %s4043_s6  ;;  %1108 = vrot.lane.b32.xlu1 %v807_v32, %s4043_s6  ;;  %v890_v33 = vcombine.low %v731_v19, %v813_v31  ;;  %v891_v34 = vcombine.high %v731_v19, %v813_v31 }
 0x1fc   : > { %v898_v45 = vrot.slane %v890_v33, %v4373_v36  ;;  %v905_v46 = vrot.slane %v891_v34, %v4373_v36 }
 0x1fd   : > { %v819_v39 = vpop.permute.xlu1 %818  ;;  %v817_v40 = vpop.permute.xlu0 %816 }
 0x1fe   : > { %v906_v41 = vcombine.low %v807_v32, %v819_v39  ;;  %v907_v42 = vcombine.high %v807_v32, %v819_v39  ;;  %v838_v43 = vcombine.low %v805_v26, %v817_v40  ;;  %v839_v44 = vcombine.high %v805_v26, %v817_v40  ;;  %1112 = vrot.lane.b32.xlu1 %v813_v31, %s4043_s6 }
 0x1ff   : > { %1114 = vrot.lane.b32.xlu0 %v817_v40, %s4043_s6 }
 0x200   : > { %v914_v48 = vrot.slane %v906_v41, %v4373_v36  ;;  %v921_v49 = vrot.slane %v907_v42, %v4373_v36  ;;  %v846_v50 = vrot.slane %v838_v43, %v4373_v36  ;;  %v853_v51 = vrot.slane %v839_v44, %v4373_v36 }
 0x202   : > { %v922_v54 = vcombine.low %v898_v45, %v914_v48  ;;  %v923_v55 = vcombine.high %v898_v45, %v914_v48  ;;  %v938_v56 = vcombine.low %v905_v46, %v921_v49  ;;  %v939_v57 = vcombine.high %v905_v46, %v921_v49  ;;  %1116 = vrot.lane.b32.xlu1 %v819_v39, %s4043_s6 }
 0x203   : > { %v854_v58 = vcombine.low %v830_v52, %v846_v50  ;;  %v855_v59 = vcombine.high %v830_v52, %v846_v50  ;;  %v870_v60 = vcombine.low %v837_v53, %v853_v51  ;;  %v871_v61 = vcombine.high %v837_v53, %v853_v51  ;;  %v1103_v51 = vpop.permute.xlu0 %1102  ;;  %v3374_v52 = vld [vmem:[%s4879_s5] ss:$0 sm:$0xff]  ;;  %v1105_v53 = vpop.permute.xlu1 %1104 }
 0x204   : > { %v930_v62 = vrot.slane %v922_v54, %v4378_v47  ;;  %v937_v63 = vrot.slane %v923_v55, %v4378_v47  ;;  %v946_v0 = vrot.slane %v938_v56, %v4378_v47  ;;  %v953_v1 = vrot.slane %v939_v57, %v4378_v47  ;;  %v795_v54 = vpop.f32.mrb[4].mxu1 }
 0x205   : > { %v862_v2 = vrot.slane %v854_v58, %v4378_v47  ;;  %v869_v4 = vrot.slane %v855_v59, %v4378_v47  ;;  %v878_v7 = vrot.slane %v870_v60, %v4378_v47  ;;  %v885_v8 = vrot.slane %v871_v61, %v4378_v47  ;;  %v3499_v57 = vpop.f32.mrb[5].mxu1 }
 0x206   : > { %v1026_v9 = vcombine.low %v930_v62, %v937_v63  ;;  %v3380_v10 = vcombine.high %v930_v62, %v937_v63  ;;  %v1042_v11 = vcombine.low %v946_v0, %v953_v1  ;;  %v3381_v12 = vcombine.high %v946_v0, %v953_v1  ;;  %v798_v58 = vpop.f32.mrb[6].mxu1 }
 0x207   : > { %v958_v13 = vcombine.low %v862_v2, %v869_v4  ;;  %v3378_v14 = vcombine.high %v862_v2, %v869_v4  ;;  %v974_v15 = vcombine.low %v878_v7, %v885_v8  ;;  %v3379_v16 = vcombine.high %v878_v7, %v885_v8  ;;  %v3500_v60 = vpop.f32.mrb[7].mxu1 }
 0x208   : > { %v1033_v17 = vrot.slane %v1026_v9, %v4373_v36  ;;  %v1041_v18 = vrot.slane %v3380_v10, %v4373_v36  ;;  %v1049_v19 = vrot.slane %v1042_v11, %v4373_v36  ;;  %v1057_v20 = vrot.slane %v3381_v12, %v4373_v36 }
 0x209   : > { %v965_v21 = vrot.slane %v958_v13, %v4373_v36  ;;  %v973_v22 = vrot.slane %v3378_v14, %v4373_v36  ;;  %v981_v23 = vrot.slane %v974_v15, %v4373_v36  ;;  %v989_v24 = vrot.slane %v3379_v16, %v4373_v36 }
 0x20a   : > { %v1058_v25 = vcombine.low %v1033_v17, %v1041_v18  ;;  %v1059_v26 = vcombine.high %v1033_v17, %v1041_v18  ;;  %v1074_v27 = vcombine.low %v1049_v19, %v1057_v20  ;;  %v1075_v28 = vcombine.high %v1049_v19, %v1057_v20 }
 0x20b   : > { %v991_v29 = vcombine.high %v965_v21, %v973_v22  ;;  %v1007_v30 = vcombine.high %v981_v23, %v989_v24  ;;  %v990_v31 = vcombine.low %v965_v21, %v973_v22  ;;  %v1006_v32 = vcombine.low %v981_v23, %v989_v24 }
 0x20c   : > { %v1066_v33 = vrot.slane %v1058_v25, %v4378_v47  ;;  %v1082_v34 = vrot.slane %v1074_v27, %v4378_v47  ;;  %v1073_v35 = vrot.slane %v1059_v26, %v4378_v47  ;;  %v1089_v40 = vrot.slane %v1075_v28, %v4378_v47 }
 0x20d   : > { %v998_v37 = vrot.slane %v990_v31, %v4378_v47  ;;  %v1005_v38 = vrot.slane %v991_v29, %v4378_v47  ;;  %v1021_v39 = vrot.slane %v1007_v30, %v4378_v47  ;;  %v1014_v41 = vrot.slane %v1006_v32, %v4378_v47 }
 0x20e   : > { %v4412_v42 = vcombine.low %v1066_v33, %v1082_v34  ;;  %v4414_v43 = vcombine.high %v1066_v33, %v1082_v34  ;;  %v4418_v45 = vcombine.low %v1073_v35, %v1089_v40  ;;  %v4422_v48 = vcombine.high %v1073_v35, %v1089_v40 }
 0x20f   : > { %v4416_v44 = vcombine.low %v1005_v38, %v1021_v39  ;;  %v4420_v46 = vcombine.high %v1005_v38, %v1021_v39  ;;  %v4424_v49 = vcombine.low %v998_v37, %v1014_v41  ;;  %v4426_v50 = vcombine.high %v998_v37, %v1014_v41 }
 0x210   : > { %v4431_v56 = vadd.f32 %v3374_v52, %v795_v54  ;;  %v4433_v59 = vadd.f32 %v3374_v52, %v798_v58 }
 0x212   : > { %1408 = vrot.lane.b32.xlu1 %v4431_v56, %s4041_s29 }
 0x268   : > { %v1107_v55 = vpop.permute.xlu0 %1106 }
 0x26c   : > { %v1109_v61 = vpop.permute.xlu1 %1108  ;;  %v1111_v62 = vpop.permute.xlu0 %1110 }
 0x26d   : > { %v1126_v63 = vcombine.low %v1103_v51, %v1111_v62  ;;  %v1127_v0 = vcombine.high %v1103_v51, %v1111_v62 }
 0x26f   : > { %v1134_v10 = vrot.slane %v1126_v63, %v4373_v36  ;;  %v1141_v11 = vrot.slane %v1127_v0, %v4373_v36 }
 0x270   : > { %v1113_v1 = vpop.permute.xlu1 %1112 }
 0x271   : > { %v1115_v2 = vpop.permute.xlu0 %1114  ;;  %v1194_v8 = vcombine.low %v1105_v53, %v1113_v1  ;;  %v1195_v9 = vcombine.high %v1105_v53, %v1113_v1 }
 0x272   : > { %v1142_v4 = vcombine.low %v1107_v55, %v1115_v2  ;;  %v1143_v7 = vcombine.high %v1107_v55, %v1115_v2 }
 0x273   : > { %v1202_v21 = vrot.slane %v1194_v8, %v4373_v36  ;;  %v1209_v22 = vrot.slane %v1195_v9, %v4373_v36 }
 0x274   : > { %v1150_v12 = vrot.slane %v1142_v4, %v4373_v36  ;;  %v1157_v13 = vrot.slane %v1143_v7, %v4373_v36  ;;  %v1117_v14 = vpop.permute.xlu1 %1116 }
 0x275   : > { %v1210_v15 = vcombine.low %v1109_v61, %v1117_v14  ;;  %v1211_v16 = vcombine.high %v1109_v61, %v1117_v14 }
 0x276   : > { %v1158_v17 = vcombine.low %v1134_v10, %v1150_v12  ;;  %v1159_v18 = vcombine.high %v1134_v10, %v1150_v12  ;;  %v1174_v19 = vcombine.low %v1141_v11, %v1157_v13  ;;  %v1175_v20 = vcombine.high %v1141_v11, %v1157_v13 }
 0x277   : > { %v1218_v23 = vrot.slane %v1210_v15, %v4373_v36  ;;  %v1225_v24 = vrot.slane %v1211_v16, %v4373_v36 }
 0x278   : > { %v1166_v25 = vrot.slane %v1158_v17, %v4378_v47  ;;  %v1173_v26 = vrot.slane %v1159_v18, %v4378_v47  ;;  %v1182_v27 = vrot.slane %v1174_v19, %v4378_v47  ;;  %v1189_v28 = vrot.slane %v1175_v20, %v4378_v47 }
 0x279   : > { %v1226_v29 = vcombine.low %v1202_v21, %v1218_v23  ;;  %v1227_v30 = vcombine.high %v1202_v21, %v1218_v23  ;;  %v1242_v31 = vcombine.low %v1209_v22, %v1225_v24  ;;  %v1243_v32 = vcombine.high %v1209_v22, %v1225_v24 }
 0x27a   : > { %v1262_v33 = vcombine.low %v1166_v25, %v1173_v26  ;;  %v3382_v34 = vcombine.high %v1166_v25, %v1173_v26  ;;  %v1278_v35 = vcombine.low %v1182_v27, %v1189_v28  ;;  %v3383_v37 = vcombine.high %v1182_v27, %v1189_v28 }
 0x27b   : > { %v1234_v38 = vrot.slane %v1226_v29, %v4378_v47  ;;  %v1241_v39 = vrot.slane %v1227_v30, %v4378_v47  ;;  %v1250_v40 = vrot.slane %v1242_v31, %v4378_v47  ;;  %v1257_v41 = vrot.slane %v1243_v32, %v4378_v47 }
 0x27c   : > { %v1269_v51 = vrot.slane %v1262_v33, %v4373_v36  ;;  %v1277_v52 = vrot.slane %v3382_v34, %v4373_v36  ;;  %v1285_v53 = vrot.slane %v1278_v35, %v4373_v36  ;;  %v1293_v54 = vrot.slane %v3383_v37, %v4373_v36 }
 0x27d   : > { %v1330_v55 = vcombine.low %v1234_v38, %v1241_v39  ;;  %v3384_v57 = vcombine.high %v1234_v38, %v1241_v39  ;;  %v1346_v58 = vcombine.low %v1250_v40, %v1257_v41  ;;  %v3385_v60 = vcombine.high %v1250_v40, %v1257_v41 }
 0x27e   : > { %v1294_v61 = vcombine.low %v1269_v51, %v1277_v52  ;;  %v1310_v62 = vcombine.low %v1285_v53, %v1293_v54  ;;  %v1295_v17 = vcombine.high %v1269_v51, %v1277_v52  ;;  %v1311_v18 = vcombine.high %v1285_v53, %v1293_v54 }
 0x27f   : > { %v1337_v63 = vrot.slane %v1330_v55, %v4373_v36  ;;  %v1345_v0 = vrot.slane %v3384_v57, %v4373_v36  ;;  %v1353_v1 = vrot.slane %v1346_v58, %v4373_v36  ;;  %v1361_v2 = vrot.slane %v3385_v60, %v4373_v36 }
 0x280   : > { %v1302_v4 = vrot.slane %v1294_v61, %v4378_v47  ;;  %v1318_v7 = vrot.slane %v1310_v62, %v4378_v47  ;;  %v1309_v25 = vrot.slane %v1295_v17, %v4378_v47  ;;  %v1325_v26 = vrot.slane %v1311_v18, %v4378_v47 }
 0x281   : > { %v1362_v8 = vcombine.low %v1337_v63, %v1345_v0  ;;  %v1378_v9 = vcombine.low %v1353_v1, %v1361_v2  ;;  %v1363_v22 = vcombine.high %v1337_v63, %v1345_v0  ;;  %v1379_v23 = vcombine.high %v1353_v1, %v1361_v2 }
 0x282   : > { %v1326_v10 = vcombine.low %v1302_v4, %v1318_v7  ;;  %v1327_v16 = vcombine.high %v1302_v4, %v1318_v7  ;;  %v1094_v27 = vpack.c.bf16 %v4424_v49, %v4424_v49  ;;  %v1328_v32 = vcombine.low %v1309_v25, %v1325_v26 }
 0x283   : > { %v1370_v11 = vrot.slane %v1362_v8, %v4378_v47  ;;  %v1386_v12 = vrot.slane %v1378_v9, %v4378_v47  ;;  %v1377_v29 = vrot.slane %v1363_v22, %v4378_v47  ;;  %v1393_v30 = vrot.slane %v1379_v23, %v4378_v47 }
 0x284   : > { %v1398_v13 = vpack.c.bf16 %v1326_v10, %v1326_v10  ;;  %v1400_v24 = vpack.c.bf16 %v1327_v16, %v1327_v16  ;;  %v1095_v33 = vpack.c.bf16 %v4412_v42, %v4412_v42  ;;  %v1402_v35 = vpack.c.bf16 %v1328_v32, %v1328_v32 }
 0x285   : > { %v1394_v14 = vcombine.low %v1370_v11, %v1386_v12  ;;  %v1395_v21 = vcombine.high %v1370_v11, %v1386_v12  ;;  %v1396_v34 = vcombine.low %v1377_v29, %v1393_v30  ;;  %v1096_v42 = vpack.c.bf16 %v4426_v50, %v4426_v50 }
 0x286   : > { %v1711_v15 = vsel %vm1706_vm3, %v1398_v13, 0  ;;  %v1803_v31 = vsel %vm1706_vm3, %v1400_v24, 0  ;;  %v1895_v38 = vsel %vm1706_vm3, %v1402_v35, 0  ;;  %v1329_v39 = vcombine.high %v1309_v25, %v1325_v26 }
 0x287   : > { %3502 = vmatpush3.bf16.xpose.msra.mxu0 %v1711_v15  ;;  %v1399_v19 = vpack.c.bf16 %v1394_v14, %v1394_v14  ;;  %v1401_v28 = vpack.c.bf16 %v1395_v21, %v1395_v21  ;;  %v1403_v37 = vpack.c.bf16 %v1396_v34, %v1396_v34  ;;  %v1097_v40 = vpack.c.bf16 %v4414_v43, %v4414_v43  ;;  %v4542_v34 = vpop.permute.xlu1 %1408 }
 0x288   : > { %3513 = vmatprep.subr.bf16.mxu0 %v4038_v3  ;;  %v1397_v50 = vcombine.high %v1377_v29, %v1393_v30  ;;  %v1404_v51 = vpack.c.bf16 %v1329_v39, %v1329_v39  ;;  %v1098_v43 = vpack.c.bf16 %v4416_v44, %v4416_v44  ;;  %v1099_v54 = vpack.c.bf16 %v4418_v45, %v4418_v45 }
 0x289   : > { %v1757_v20 = vsel %vm1706_vm3, %v1399_v19, 0  ;;  %v1849_v49 = vsel %vm1706_vm3, %v1401_v28, 0  ;;  %v1941_v41 = vsel %vm1706_vm3, %v1403_v37, 0  ;;  %v1100_v44 = vpack.c.bf16 %v4420_v46, %v4420_v46 }
 0x28a   : > { %3508 = vmatpush3.bf16.xpose.msra.mxu1 %v1757_v20  ;;  %v1405_v52 = vpack.c.bf16 %v1397_v50, %v1397_v50  ;;  %v1987_v53 = vsel %vm1706_vm3, %v1404_v51, 0  ;;  %v1101_v45 = vpack.c.bf16 %v4422_v48, %v4422_v48 }
 0x28b   : > { %3519 = vmatprep.subr.bf16.mxu1 %v4038_v3 }
 0x28c   : > { %v2033_v55 = vsel %vm1706_vm3, %v1405_v52, 0 }
 0x28e   : > { %3504 = vmatmul.mubr.msk.bf16.vlgmr.msra.gmra.mrb[0].mxu0 %vm1706_vm3, %v1094_v27 }
 0x28f   : > { %3514 = vmatpush3.bf16.xpose.msra.mxu0 %v1803_v31  ;;  %3515 = vmatprep.mubr.msk.bf16.mxu0 %vm4039_vm1, %v4038_v3 }
 0x290   : > { %3525 = vmatprep.subr.bf16.mxu0 %v4038_v3 }
 0x291   : > { %3510 = vmatmul.mubr.msk.bf16.vlgmr.msra.gmra.mrb[8].mxu1 %vm1706_vm3, %v1095_v33 }
 0x292   : > { %3520 = vmatpush3.bf16.xpose.msra.mxu1 %v1849_v49  ;;  %3521 = vmatprep.mubr.msk.bf16.mxu1 %vm4039_vm1, %v4038_v3 }
 0x293   : > { %3531 = vmatprep.subr.bf16.mxu1 %v4038_v3 }
 0x296   : > { %3516 = vmatmul.mubr.msk.bf16.vlgmr.msra.gmra.mrb[4].mxu0 %vm1706_vm3, %v1096_v42 }
 0x297   : > { %3526 = vmatpush3.bf16.xpose.msra.mxu0 %v1895_v38  ;;  %3527 = vmatprep.mubr.msk.bf16.mxu0 %vm4039_vm1, %v4038_v3 }
 0x298   : > { %3537 = vmatprep.subr.bf16.mxu0 %v4038_v3 }
 0x299   : > { %3522 = vmatmul.mubr.msk.bf16.vlgmr.msra.gmra.mrb[12].mxu1 %vm1706_vm3, %v1097_v40 }
 0x29a   : > { %3532 = vmatpush3.bf16.xpose.msra.mxu1 %v1941_v41  ;;  %3533 = vmatprep.mubr.msk.bf16.mxu1 %vm4039_vm1, %v4038_v3 }
 0x29b   : > { %3543 = vmatprep.subr.bf16.mxu1 %v4038_v3 }
 0x29e   : > { %3528 = vmatmul.mubr.msk.bf16.vlgmr.msra.gmra.mrb[8].mxu0 %vm1706_vm3, %v1098_v43 }
 0x29f   : > { %3538 = vmatpush3.bf16.xpose.msra.mxu0 %v1987_v53  ;;  %3539 = vmatprep.mubr.msk.bf16.mxu0 %vm4039_vm1, %v4038_v3 }
 0x2a0   : > { %3549 = vmatprep.subr.bf16.mxu0 %v4038_v3 }
 0x2a1   : > { %3534 = vmatmul.mubr.msk.bf16.vlgmr.msra.gmra.mrb[16].mxu1 %vm1706_vm3, %v1099_v54 }
 0x2a2   : > { %3544 = vmatpush3.bf16.xpose.msra.mxu1 %v2033_v55  ;;  %3545 = vmatprep.mubr.msk.bf16.mxu1 %vm4039_vm1, %v4038_v3 }
 0x2a3   : > { %3555 = vmatprep.subr.bf16.mxu1 %v4038_v3 }
 0x2a6   : > { %3540 = vmatmul.mubr.msk.bf16.vlgmr.msra.gmra.mrb[12].mxu0 %vm1706_vm3, %v1100_v44 }
 0x2a7   : > { %3551 = vmatprep.mubr.msk.bf16.mxu0 %vm4039_vm1, %v4038_v3 }
 0x2a9   : > { %3546 = vmatmul.mubr.msk.bf16.vlgmr.msra.gmra.mrb[20].mxu1 %vm1706_vm3, %v1101_v45 }
 0x2aa   : > { %3557 = vmatprep.mubr.msk.bf16.mxu1 %vm4039_vm1, %v4038_v3 }
 0x361   : > { %v1747_v57 = vpop.f32.mrb[0].mxu0 }
 0x362   : > { %v3505_v58 = vpop.f32.mrb[1].mxu0  ;;  %v2075_v60 = vsel %vm1706_vm3, %v1747_v57, -inf }
 0x363   : > { %2076 = vmax.xlane.f32.xlu0 %v2075_v60  ;;  %v1750_v61 = vpop.f32.mrb[2].mxu0 }
 0x364   : > { %v3506_v46 = vpop.f32.mrb[3].mxu0  ;;  %v1793_v62 = vpop.f32.mrb[8].mxu1 }
 0x365   : > { %v3511_v63 = vpop.f32.mrb[9].mxu1  ;;  %v2078_v0 = vsel %vm1706_vm3, %v1793_v62, -inf }
 0x366   : > { %2079 = vmax.xlane.f32.xlu1 %v2078_v0  ;;  %v1796_v48 = vpop.f32.mrb[10].mxu1 }
 0x367   : > { %v3512_v1 = vpop.f32.mrb[11].mxu1 }
 0x369   : > { %v4527_v2 = vpop.f32.mrb[4].mxu0 }
 0x36a   : > { %v3517_v4 = vpop.f32.mrb[5].mxu0  ;;  %v2081_v7 = vsel %vm1706_vm3, %v4527_v2, -inf }
 0x36b   : > { %2082 = vmax.xlane.f32.xlu0 %v2081_v7  ;;  %v1842_v8 = vpop.f32.mrb[6].mxu0 }
 0x36c   : > { %v3518_v9 = vpop.f32.mrb[7].mxu0  ;;  %v1885_v10 = vpop.f32.mrb[12].mxu1 }
 0x36d   : > { %v3523_v11 = vpop.f32.mrb[13].mxu1  ;;  %v2084_v12 = vsel %vm1706_vm3, %v1885_v10, -inf }
 0x36e   : > { %v1888_v13 = vpop.f32.mrb[14].mxu1 }
 0x36f   : > { %2085 = vmax.xlane.f32.xlu0 %v2084_v12  ;;  %v3524_v14 = vpop.f32.mrb[15].mxu1 }
 0x371   : > { %v1931_v15 = vpop.f32.mrb[8].mxu0 }
 0x372   : > { %v3529_v16 = vpop.f32.mrb[9].mxu0  ;;  %v2087_v17 = vsel %vm1706_vm3, %v1931_v15, -inf }
 0x373   : > { %v1934_v18 = vpop.f32.mrb[10].mxu0  ;;  %2088 = vmax.xlane.f32.xlu1 %v2087_v17 }
 0x374   : > { %v3530_v19 = vpop.f32.mrb[11].mxu0  ;;  %v1977_v20 = vpop.f32.mrb[16].mxu1 }
 0x375   : > { %v3535_v21 = vpop.f32.mrb[17].mxu1  ;;  %v2090_v22 = vsel %vm1706_vm3, %v1977_v20, -inf }
 0x376   : > { %2091 = vmax.xlane.f32.xlu0 %v2090_v22  ;;  %v1980_v23 = vpop.f32.mrb[18].mxu1 }
 0x377   : > { %v3536_v24 = vpop.f32.mrb[19].mxu1 }
 0x379   : > { %v2023_v25 = vpop.f32.mrb[12].mxu0 }
 0x37a   : > { %v3541_v26 = vpop.f32.mrb[13].mxu0  ;;  %v2093_v27 = vsel %vm1706_vm3, %v2023_v25, -inf }
 0x37b   : > { %v2026_v28 = vpop.f32.mrb[14].mxu0  ;;  %2094 = vmax.xlane.f32.xlu1 %v2093_v27 }
 0x37c   : > { %v3542_v29 = vpop.f32.mrb[15].mxu0  ;;  %v2069_v30 = vpop.f32.mrb[20].mxu1 }
 0x37d   : > { %v3547_v31 = vpop.f32.mrb[21].mxu1  ;;  %v2096_v32 = vsel %vm1706_vm3, %v2069_v30, -inf }
 0x37e   : > { %2097 = vmax.xlane.f32.xlu0 %v2096_v32  ;;  %v2072_v33 = vpop.f32.mrb[22].mxu1 }
 0x37f   : > { %v3548_v49 = vpop.f32.mrb[23].mxu1 }
 0x38c   : > { %1414 = vrot.lane.b32.xlu1 %v4431_v56, %s4040_s17 }
 0x390   : > { %1416 = vrot.lane.b32.xlu1 %v4433_v59, %s4040_s17 }
 0x394   : > { %1410 = vrot.lane.b32.xlu0 %v4433_v59, %s4041_s29 }
 0x3f0   : > { %v2077_v35 = vpop.xlane.xlu0 %2076 }
 0x3f1   : > { %v2099_v42 = vsub.f32 %v1747_v57, %v2077_v35 }
 0x3f3   : > { %v2107_v37 = vmul.f32 1.442695, %v2099_v42  ;;  %v2080_v38 = vpop.xlane.xlu1 %2079 }
 0x3f4   : > { %v2100_v39 = vsub.f32 %v1793_v62, %v2080_v38 }
 0x3f5   : > { %3749 = vpow2.f32 %v2107_v37 }
 0x3f6   : > { %v2109_v40 = vmul.f32 1.442695, %v2100_v39 }
 0x3f8   : > { %3751 = vpow2.f32 %v2109_v40  ;;  %v2083_v52 = vpop.xlane.xlu0 %2082 }
 0x3f9   : > { %v2101_v45 = vsub.f32 %v4527_v2, %v2083_v52 }
 0x3fb   : > { %v2111_v60 = vmul.f32 1.442695, %v2101_v45 }
 0x3fc   : > { %v2086_v53 = vpop.xlane.xlu0 %2085 }
 0x3fd   : > { %v2102_v55 = vsub.f32 %v1885_v10, %v2086_v53 }
 0x3ff   : > { %v4544_v41 = vpop.eup %3749  ;;  %v2113_v57 = vmul.f32 1.442695, %v2102_v55 }
 0x400   : > { %v2123_v50 = vsel %vm1706_vm3, %v4544_v41, 0.0  ;;  %v2089_v54 = vpop.xlane.xlu1 %2088 }
 0x401   : > { %2124 = vadd.xlane.f32.xlu1 %v2123_v50  ;;  %v2103_v61 = vsub.f32 %v1931_v15, %v2089_v54  ;;  %3753 = vpow2.f32 %v2113_v57 }
 0x402   : > { %v4548_v51 = vpop.eup %3751  ;;  %3755 = vpow2.f32 %v2111_v60 }
 0x403   : > { %v2126_v43 = vsel %vm1706_vm3, %v4548_v51, 0.0  ;;  %v2092_v46 = vpop.xlane.xlu0 %2091  ;;  %v2115_v63 = vmul.f32 1.442695, %v2103_v61 }
 0x404   : > { %2127 = vadd.xlane.f32.xlu0 %v2126_v43  ;;  %v2104_v0 = vsub.f32 %v1977_v20, %v2092_v46 }
 0x406   : > { %v2117_v1 = vmul.f32 1.442695, %v2104_v0 }
 0x408   : > { %v2095_v44 = vpop.xlane.xlu1 %2094 }
 0x409   : > { %v2105_v58 = vsub.f32 %v2023_v25, %v2095_v44 }
 0x40b   : > { %v2119_v62 = vmul.f32 1.442695, %v2105_v58  ;;  %v2098_v48 = vpop.xlane.xlu0 %2097  ;;  %v4557_v7 = vpop.eup %3753 }
 0x40c   : > { %v2106_v4 = vsub.f32 %v2069_v30, %v2098_v48  ;;  %v4559_v2 = vpop.eup %3755  ;;  %v2132_v9 = vsel %vm1706_vm3, %v4557_v7, 0.0  ;;  %v1415_v19 = vpop.permute.xlu1 %1414 }
 0x40d   : > { %3757 = vpow2.f32 %v2119_v62  ;;  %v2129_v11 = vsel %vm1706_vm3, %v4559_v2, 0.0  ;;  %v1426_v26 = vcombine.low %v4431_v56, %v1415_v19  ;;  %v1427_v30 = vcombine.high %v4431_v56, %v1415_v19 }
 0x40e   : > { %3759 = vpow2.f32 %v2115_v63  ;;  %v2121_v8 = vmul.f32 1.442695, %v2106_v4 }
 0x40f   : > { %3761 = vpow2.f32 %v2117_v1  ;;  %v1411_v21 = vpop.permute.xlu0 %1410  ;;  %v1434_v42 = vrot.slane %v1426_v26, %v4373_v36 }
 0x410   : > { %3763 = vpow2.f32 %v2121_v8  ;;  %v1417_v20 = vpop.permute.xlu1 %1416 }
 0x411   : > { %v1494_v23 = vcombine.low %v4433_v59, %v1417_v20  ;;  %v1495_v24 = vcombine.high %v4433_v59, %v1417_v20 }
 0x412   : > { %1422 = vrot.lane.b32.xlu1 %v4433_v59, %s4042_s1 }
 0x413   : > { %v1502_v31 = vrot.slane %v1494_v23, %v4373_v36  ;;  %v1509_v32 = vrot.slane %v1495_v24, %v4373_v36 }
 0x417   : > { %v4563_v10 = vpop.eup %3757 }
 0x418   : > { %v4567_v12 = vpop.eup %3759  ;;  %v2141_v13 = vsel %vm1706_vm3, %v4563_v10, 0.0 }
 0x419   : > { %v2135_v14 = vsel %vm1706_vm3, %v4567_v12, 0.0  ;;  %v4573_v15 = vpop.eup %3761 }
 0x41a   : > { %1420 = vrot.lane.b32.xlu0 %v4431_v56, %s4042_s1  ;;  %v2138_v16 = vsel %vm1706_vm3, %v4573_v15, 0.0  ;;  %v4577_v17 = vpop.eup %3763  ;;  %v1441_v56 = vrot.slane %v1427_v30, %v4373_v36 }
 0x41b   : > { %v2144_v18 = vsel %vm1706_vm3, %v4577_v17, 0.0 }
 0x436   : > { %2133 = vadd.xlane.f32.xlu1 %v2132_v9 }
 0x439   : > { %2130 = vadd.xlane.f32.xlu0 %v2129_v11 }
 0x43a   : > { %2142 = vadd.xlane.f32.xlu1 %v2141_v13 }
 0x43d   : > { %2136 = vadd.xlane.f32.xlu0 %v2135_v14 }
 0x441   : > { %2139 = vadd.xlane.f32.xlu0 %v2138_v16 }
 0x445   : > { %2145 = vadd.xlane.f32.xlu0 %v2144_v18 }
 0x48e   : > { %v2125_v22 = vpop.xlane.xlu1 %2124 }
 0x491   : > { %v2128_v25 = vpop.xlane.xlu0 %2127 }
 0x492   : > { %v1423_v27 = vpop.permute.xlu1 %1422  ;;  %3765 = vrcp.f32 %v2128_v25 }
 0x493   : > { %v1510_v28 = vcombine.low %v1411_v21, %v1423_v27  ;;  %v1511_v29 = vcombine.high %v1411_v21, %v1423_v27  ;;  %3767 = vrcp.f32 %v2125_v22 }
 0x495   : > { %v1518_v33 = vrot.slane %v1510_v28, %v4373_v36  ;;  %v1525_v49 = vrot.slane %v1511_v29, %v4373_v36  ;;  %v1421_v35 = vpop.permute.xlu0 %1420 }
 0x496   : > { %v1442_v59 = vcombine.low %v4542_v34, %v1421_v35  ;;  %v1443_v37 = vcombine.high %v4542_v34, %v1421_v35 }
 0x497   : > { %v1526_v38 = vcombine.low %v1502_v31, %v1518_v33  ;;  %v1527_v39 = vcombine.high %v1502_v31, %v1518_v33  ;;  %v1542_v40 = vcombine.low %v1509_v32, %v1525_v49  ;;  %v1543_v50 = vcombine.high %v1509_v32, %v1525_v49 }
 0x498   : > { %v1450_v43 = vrot.slane %v1442_v59, %v4373_v36  ;;  %v1457_v52 = vrot.slane %v1443_v37, %v4373_v36 }
 0x499   : > { %v1534_v53 = vrot.slane %v1526_v38, %v4378_v47  ;;  %v1541_v54 = vrot.slane %v1527_v39, %v4378_v47  ;;  %v1550_v55 = vrot.slane %v1542_v40, %v4378_v47  ;;  %v1557_v44 = vrot.slane %v1543_v50, %v4378_v47 }
 0x49a   : > { %v1458_v34 = vcombine.low %v1434_v42, %v1450_v43  ;;  %v1459_v45 = vcombine.high %v1434_v42, %v1450_v43  ;;  %v1474_v57 = vcombine.low %v1441_v56, %v1457_v52  ;;  %v1475_v0 = vcombine.high %v1441_v56, %v1457_v52 }
 0x49b   : > { %v1630_v58 = vcombine.low %v1534_v53, %v1541_v54  ;;  %v3388_v60 = vcombine.high %v1534_v53, %v1541_v54  ;;  %v1646_v61 = vcombine.low %v1550_v55, %v1557_v44  ;;  %v3389_v46 = vcombine.high %v1550_v55, %v1557_v44 }
 0x49c   : > { %v1466_v62 = vrot.slane %v1458_v34, %v4378_v47  ;;  %v1473_v63 = vrot.slane %v1459_v45, %v4378_v47  ;;  %v1482_v48 = vrot.slane %v1474_v57, %v4378_v47  ;;  %v1489_v11 = vrot.slane %v1475_v0, %v4378_v47  ;;  %v3766_v25 = vpop.eup %3765 }
 0x49d   : > { %v1637_v1 = vrot.slane %v1630_v58, %v4373_v36  ;;  %v1645_v4 = vrot.slane %v3388_v60, %v4373_v36  ;;  %v1653_v8 = vrot.slane %v1646_v61, %v4373_v36  ;;  %v1661_v9 = vrot.slane %v3389_v46, %v4373_v36  ;;  %v3768_v31 = vpop.eup %3767 }
 0x49e   : > { %v1562_v13 = vcombine.low %v1466_v62, %v1473_v63  ;;  %v3386_v14 = vcombine.high %v1466_v62, %v1473_v63  ;;  %v1578_v21 = vcombine.low %v1482_v48, %v1489_v11  ;;  %v3387_v22 = vcombine.high %v1482_v48, %v1489_v11 }
 0x49f   : > { %v1662_v16 = vcombine.low %v1637_v1, %v1645_v4  ;;  %v1678_v18 = vcombine.low %v1653_v8, %v1661_v9  ;;  %v4615_v49 = vmul.f32 %v3766_v25, %v4548_v51  ;;  %v4623_v50 = vmul.f32 %v3768_v31, %v4544_v41 }
 0x4a0   : > { %v1569_v19 = vrot.slane %v1562_v13, %v4373_v36  ;;  %v1577_v20 = vrot.slane %v3386_v14, %v4373_v36  ;;  %v1585_v26 = vrot.slane %v1578_v21, %v4373_v36  ;;  %v1593_v27 = vrot.slane %v3387_v22, %v4373_v36 }
 0x4a1   : > { %v1670_v23 = vrot.slane %v1662_v16, %v4378_v47  ;;  %v1686_v24 = vrot.slane %v1678_v18, %v4378_v47  ;;  %v2164_v40 = vpack.c.bf16 %v4615_v49, %v4615_v49  ;;  %v2163_v53 = vpack.c.bf16 %v4623_v50, %v4623_v50 }
 0x4a2   : > { %v1594_v28 = vcombine.low %v1569_v19, %v1577_v20  ;;  %v1610_v33 = vcombine.low %v1585_v26, %v1593_v27  ;;  %v1663_v55 = vcombine.high %v1637_v1, %v1645_v4  ;;  %v1679_v44 = vcombine.high %v1653_v8, %v1661_v9 }
 0x4a3   : > { %v1694_v29 = vcombine.low %v1670_v23, %v1686_v24  ;;  %v1695_v30 = vcombine.high %v1670_v23, %v1686_v24  ;;  %v1595_v45 = vcombine.high %v1569_v19, %v1577_v20  ;;  %v1611_v57 = vcombine.high %v1585_v26, %v1593_v27 }
 0x4a4   : > { %v1602_v32 = vrot.slane %v1594_v28, %v4378_v47  ;;  %v1618_v42 = vrot.slane %v1610_v33, %v4378_v47  ;;  %v1677_v58 = vrot.slane %v1663_v55, %v4378_v47  ;;  %v1693_v60 = vrot.slane %v1679_v44, %v4378_v47 }
 0x4a5   : > { %v1699_v35 = vpack.c.bf16 %v1694_v29, %v1694_v29  ;;  %v1701_v37 = vpack.c.bf16 %v1695_v30, %v1695_v30  ;;  %v1609_v46 = vrot.slane %v1595_v45, %v4378_v47  ;;  %v1625_v62 = vrot.slane %v1611_v57, %v4378_v47 }
 0x4a6   : > { %v1626_v38 = vcombine.low %v1602_v32, %v1618_v42  ;;  %v1627_v39 = vcombine.high %v1602_v32, %v1618_v42  ;;  %v1696_v63 = vcombine.low %v1677_v58, %v1693_v60  ;;  %v1697_v22 = vcombine.high %v1677_v58, %v1693_v60 }
 0x4a7   : > { %v2222_v59 = vsel %vm2174_vm4, %v1699_v35, 0  ;;  %v2314_v51 = vsel %vm2174_vm4, %v1701_v37, 0  ;;  %v1628_v1 = vcombine.low %v1609_v46, %v1625_v62  ;;  %v1629_v21 = vcombine.high %v1609_v46, %v1625_v62 }
 0x4a8   : > { %3556 = vmatpush3.bf16.msra.mxu1 %v2222_v59  ;;  %v1698_v56 = vpack.c.bf16 %v1626_v38, %v1626_v38  ;;  %v1700_v52 = vpack.c.bf16 %v1627_v39, %v1627_v39  ;;  %v1703_v9 = vpack.c.bf16 %v1696_v63, %v1696_v63  ;;  %v1705_v27 = vpack.c.bf16 %v1697_v22, %v1697_v22 }
 0x4a9   : > { %3567 = vmatprep.subr.bf16.mxu1 %v4038_v3  ;;  %v1702_v18 = vpack.c.bf16 %v1628_v1, %v1628_v1  ;;  %v1704_v26 = vpack.c.bf16 %v1629_v21, %v1629_v21 }
 0x4aa   : > { %v2176_v43 = vsel %vm2174_vm4, %v1698_v56, 0  ;;  %v2268_v41 = vsel %vm2174_vm4, %v1700_v52, 0  ;;  %v2406_v19 = vsel %vm2174_vm4, %v1703_v9, 0  ;;  %v2498_v32 = vsel %vm2174_vm4, %v1705_v27, 0 }
 0x4ab   : > { %3558 = vmatmul.mubr.msk.bf16.vlgmr.msra.gmra.mrb[24].mxu1 %vm1706_vm3, %v2164_v40  ;;  %3550 = vmatpush3.bf16.msra.mxu0 %v2176_v43 }
 0x4ac   : > { %3568 = vmatpush3.bf16.msra.mxu1 %v2314_v51  ;;  %3569 = vmatprep.mubr.msk.bf16.mxu1 %vm4039_vm1, %v4038_v3 }
 0x4ad   : > { %3579 = vmatprep.subr.bf16.mxu1 %v4038_v3  ;;  %3561 = vmatprep.subr.bf16.mxu0 %v4038_v3 }
 0x4ae   : > { %3552 = vmatmul.mubr.msk.bf16.vlgmr.msra.gmra.mrb[16].mxu0 %vm1706_vm3, %v2163_v53 }
 0x4af   : > { %3562 = vmatpush3.bf16.msra.mxu0 %v2268_v41  ;;  %3563 = vmatprep.mubr.msk.bf16.mxu0 %vm4039_vm1, %v4038_v3 }
 0x4b0   : > { %3573 = vmatprep.subr.bf16.mxu0 %v4038_v3 }
 0x4c3   : > { %v2134_v54 = vpop.xlane.xlu1 %2133 }
 0x4c4   : > { %3769 = vrcp.f32 %v2134_v54 }
 0x4c6   : > { %v2131_v34 = vpop.xlane.xlu0 %2130 }
 0x4c7   : > { %3771 = vrcp.f32 %v2131_v34  ;;  %v2143_v8 = vpop.xlane.xlu1 %2142 }
 0x4ca   : > { %v2137_v61 = vpop.xlane.xlu0 %2136 }
 0x4cb   : > { %3773 = vrcp.f32 %v2137_v61 }
 0x4ce   : > { %v3770_v0 = vpop.eup %3769  ;;  %v2140_v48 = vpop.xlane.xlu0 %2139 }
 0x4cf   : > { %v4644_v4 = vmul.f32 %v3770_v0, %v4557_v7  ;;  %3775 = vrcp.f32 %v2140_v48 }
 0x4d0   : > { %3777 = vrcp.f32 %v2143_v8 }
 0x4d1   : > { %v3772_v11 = vpop.eup %3771  ;;  %v2166_v13 = vpack.c.bf16 %v4644_v4, %v4644_v4 }
 0x4d2   : > { %v4649_v14 = vmul.f32 %v3772_v11, %v4559_v2  ;;  %v2146_v16 = vpop.xlane.xlu0 %2145  ;;  %v2360_v2 = vsel %vm2174_vm4, %v1702_v18, 0 }
 0x4d3   : > { %3570 = vmatmul.mubr.msk.bf16.vlgmr.msra.gmra.mrb[28].mxu1 %vm1706_vm3, %v2166_v13  ;;  %3779 = vrcp.f32 %v2146_v16 }
 0x4d4   : > { %3580 = vmatpush3.bf16.msra.mxu1 %v2406_v19  ;;  %v2165_v7 = vpack.c.bf16 %v4649_v14, %v4649_v14  ;;  %3581 = vmatprep.mubr.msk.bf16.mxu1 %vm4039_vm1, %v4038_v3 }
 0x4d5   : > { %v3774_v20 = vpop.eup %3773  ;;  %3591 = vmatprep.subr.bf16.mxu1 %v4038_v3 }
 0x4d6   : > { %3564 = vmatmul.mubr.msk.bf16.vlgmr.msra.gmra.mrb[20].mxu0 %vm1706_vm3, %v2165_v7  ;;  %v4663_v23 = vmul.f32 %v3774_v20, %v4567_v12  ;;  %v2452_v12 = vsel %vm2174_vm4, %v1704_v26, 0 }
 0x4d7   : > { %3574 = vmatpush3.bf16.msra.mxu0 %v2360_v2  ;;  %3575 = vmatprep.mubr.msk.bf16.mxu0 %vm4039_vm1, %v4038_v3 }
 0x4d8   : > { %3585 = vmatprep.subr.bf16.mxu0 %v4038_v3  ;;  %v2167_v29 = vpack.c.bf16 %v4663_v23, %v4663_v23 }
 0x4d9   : > { %v3776_v24 = vpop.eup %3775 }
 0x4da   : > { %v4667_v25 = vmul.f32 %v3776_v24, %v4573_v15  ;;  %v3778_v28 = vpop.eup %3777 }
 0x4db   : > { %v4678_v15 = vmul.f32 %v3778_v28, %v4563_v10 }
 0x4dc   : > { %v2168_v30 = vpack.c.bf16 %v4667_v25, %v4667_v25 }
 0x4dd   : > { %v3780_v31 = vpop.eup %3779  ;;  %v2169_v35 = vpack.c.bf16 %v4678_v15, %v4678_v15 }
 0x4de   : > { %3576 = vmatmul.mubr.msk.bf16.vlgmr.msra.gmra.mrb[24].mxu0 %vm1706_vm3, %v2167_v29  ;;  %3582 = vmatmul.mubr.msk.bf16.vlgmr.msra.gmra.mrb[32].mxu1 %vm1706_vm3, %v2168_v30  ;;  %v4681_v33 = vmul.f32 %v3780_v31, %v4577_v17 }
 0x4df   : > { %3586 = vmatpush3.bf16.msra.mxu0 %v2452_v12  ;;  %3592 = vmatpush3.bf16.msra.mxu1 %v2498_v32 }
 0x4e0   : > { %3587 = vmatprep.mubr.msk.bf16.mxu0 %vm4039_vm1, %v4038_v3  ;;  %3593 = vmatprep.mubr.msk.bf16.mxu1 %vm4039_vm1, %v4038_v3  ;;  %v2170_v42 = vpack.c.bf16 %v4681_v33, %v4681_v33 }
 0x4e1   : > { %3597 = vmatprep.subr.bf16.mxu0 %v4038_v3 }
 0x4e6   : > { %3588 = vmatmul.mubr.msk.bf16.vlgmr.msra.gmra.mrb[28].mxu0 %vm1706_vm3, %v2169_v35  ;;  %3594 = vmatmul.mubr.msk.bf16.vlgmr.msra.gmra.mrb[36].mxu1 %vm1706_vm3, %v2170_v42 }
 0x4e7   : > { %3601 = vmatprep.mubr.msk.bf16.mxu0 %vm4039_vm1, %v4038_v3 }
 0x57e   : > { %v2258_v10 = vpop.f32.mrb[24].mxu1 }
 0x57f   : > { %v3559_v17 = vpop.f32.mrb[25].mxu1 }
 0x580   : > { %v2261_v59 = vpop.f32.mrb[26].mxu1 }
 0x581   : > { %v3560_v37 = vpop.f32.mrb[27].mxu1  ;;  %v2212_v38 = vpop.f32.mrb[16].mxu0 }
 0x582   : > { %v3553_v39 = vpop.f32.mrb[17].mxu0 }
 0x583   : > { %v2215_v40 = vpop.f32.mrb[18].mxu0 }
 0x584   : > { %v3554_v56 = vpop.f32.mrb[19].mxu0 }
 0x5a6   : > { %v2350_v51 = vpop.f32.mrb[28].mxu1 }
 0x5a7   : > { %v3571_v43 = vpop.f32.mrb[29].mxu1 }
 0x5a8   : > { %v2353_v52 = vpop.f32.mrb[30].mxu1 }
 0x5a9   : > { %v3572_v53 = vpop.f32.mrb[31].mxu1  ;;  %v2304_v41 = vpop.f32.mrb[20].mxu0 }
 0x5aa   : > { %v3565_v54 = vpop.f32.mrb[21].mxu0 }
 0x5ab   : > { %v2307_v55 = vpop.f32.mrb[22].mxu0 }
 0x5ac   : > { %v3566_v44 = vpop.f32.mrb[23].mxu0 }
 0x5b1   : > { %v2396_v34 = vpop.f32.mrb[24].mxu0  ;;  %v2442_v45 = vpop.f32.mrb[32].mxu1 }
 0x5b2   : > { %v2540_v57 = vcombine.low %v2212_v38, %v2396_v34  ;;  %v2541_v58 = vcombine.high %v2212_v38, %v2396_v34  ;;  %v2608_v60 = vcombine.low %v2258_v10, %v2442_v45  ;;  %v2609_v61 = vcombine.high %v2258_v10, %v2442_v45  ;;  %v3577_v46 = vpop.f32.mrb[25].mxu0  ;;  %v3583_v62 = vpop.f32.mrb[33].mxu1 }
 0x5b3   : > { %v2399_v63 = vpop.f32.mrb[26].mxu0  ;;  %v2445_v0 = vpop.f32.mrb[34].mxu1 }
 0x5b4   : > { %v3578_v48 = vpop.f32.mrb[27].mxu0  ;;  %v3584_v1 = vpop.f32.mrb[35].mxu1  ;;  %v2548_v20 = vrot.slane %v2540_v57, %v4373_v36  ;;  %v2555_v2 = vrot.slane %v2541_v58, %v4373_v36  ;;  %v2616_v31 = vrot.slane %v2608_v60, %v4373_v36  ;;  %v2623_v12 = vrot.slane %v2609_v61, %v4373_v36  ;;  %v3747_v0 = vld [vmem:[#allocation6] sm:$0xff]  }
 0x5b5   : > { %3598 = vmatpush3.bf16.msra.mxu0 %v3747_v0 }
 0x5b6   : > { %3599 = vmatprep.subr.bf16.mxu0 %v4038_v3 }
 0x5b9   : > { %v2488_v8 = vpop.f32.mrb[28].mxu0  ;;  %v2534_v9 = vpop.f32.mrb[36].mxu1 }
 0x5ba   : > { %v2556_v11 = vcombine.low %v2304_v41, %v2488_v8  ;;  %v2557_v13 = vcombine.high %v2304_v41, %v2488_v8  ;;  %v2624_v16 = vcombine.low %v2350_v51, %v2534_v9  ;;  %v2625_v18 = vcombine.high %v2350_v51, %v2534_v9  ;;  %v3589_v19 = vpop.f32.mrb[29].mxu0  ;;  %v3595_v7 = vpop.f32.mrb[37].mxu1 }
 0x5bb   : > { %v2491_v21 = vpop.f32.mrb[30].mxu0  ;;  %v2537_v22 = vpop.f32.mrb[38].mxu1 }
 0x5bc   : > { %v2564_v24 = vrot.slane %v2556_v11, %v4373_v36  ;;  %v2571_v26 = vrot.slane %v2557_v13, %v4373_v36  ;;  %v2632_v27 = vrot.slane %v2624_v16, %v4373_v36  ;;  %v2639_v28 = vrot.slane %v2625_v18, %v4373_v36  ;;  %v3590_v29 = vpop.f32.mrb[31].mxu0  ;;  %v3596_v30 = vpop.f32.mrb[39].mxu1 }
 0x5bd   : > { %v3748_v30 = vld [vmem:[#allocation6 + $0x8] sm:$0xff]  }
 0x5be   : > { %v2572_v32 = vcombine.low %v2548_v20, %v2564_v24  ;;  %v2573_v35 = vcombine.high %v2548_v20, %v2564_v24  ;;  %v2588_v42 = vcombine.low %v2555_v2, %v2571_v26  ;;  %v2589_v10 = vcombine.high %v2555_v2, %v2571_v26  ;;  %3600 = vmatpush3.bf16.msra.mxu0 %v3748_v30 }
 0x5bf   : > { %v2640_v17 = vcombine.low %v2616_v31, %v2632_v27  ;;  %v2641_v59 = vcombine.high %v2616_v31, %v2632_v27  ;;  %v2656_v37 = vcombine.low %v2623_v12, %v2639_v28  ;;  %v2657_v38 = vcombine.high %v2623_v12, %v2639_v28 }
 0x5c0   : > { %v2580_v39 = vrot.slane %v2572_v32, %v4378_v47  ;;  %v2587_v40 = vrot.slane %v2573_v35, %v4378_v47  ;;  %v2596_v56 = vrot.slane %v2588_v42, %v4378_v47  ;;  %v2603_v51 = vrot.slane %v2589_v10, %v4378_v47 }
 0x5c1   : > { %v2648_v43 = vrot.slane %v2640_v17, %v4378_v47  ;;  %v2655_v52 = vrot.slane %v2641_v59, %v4378_v47  ;;  %v2664_v53 = vrot.slane %v2656_v37, %v4378_v47  ;;  %v2671_v41 = vrot.slane %v2657_v38, %v4378_v47 }
 0x5c2   : > { %v2676_v54 = vcombine.low %v2580_v39, %v2587_v40  ;;  %v3406_v55 = vcombine.high %v2580_v39, %v2587_v40  ;;  %v2692_v44 = vcombine.low %v2596_v56, %v2603_v51  ;;  %v3407_v34 = vcombine.high %v2596_v56, %v2603_v51 }
 0x5c3   : > { %v2744_v45 = vcombine.low %v2648_v43, %v2655_v52  ;;  %v3408_v57 = vcombine.high %v2648_v43, %v2655_v52  ;;  %v2760_v58 = vcombine.low %v2664_v53, %v2671_v41  ;;  %v3409_v60 = vcombine.high %v2664_v53, %v2671_v41 }
 0x5c4   : > { %v2683_v61 = vrot.slane %v2676_v54, %v4373_v36  ;;  %v2691_v46 = vrot.slane %v3406_v55, %v4373_v36  ;;  %v2699_v62 = vrot.slane %v2692_v44, %v4373_v36  ;;  %v2707_v63 = vrot.slane %v3407_v34, %v4373_v36 }
 0x5c5   : > { %v2751_v48 = vrot.slane %v2744_v45, %v4373_v36  ;;  %v2759_v1 = vrot.slane %v3408_v57, %v4373_v36  ;;  %v2767_v8 = vrot.slane %v2760_v58, %v4373_v36  ;;  %v2775_v9 = vrot.slane %v3409_v60, %v4373_v36 }
 0x5c6   : > { %v2709_v11 = vcombine.high %v2683_v61, %v2691_v46  ;;  %v2725_v13 = vcombine.high %v2699_v62, %v2707_v63  ;;  %v2708_v16 = vcombine.low %v2683_v61, %v2691_v46  ;;  %v2724_v18 = vcombine.low %v2699_v62, %v2707_v63  ;;  %v3410_v61 = vld [vmem:[#allocation8] ss:$0 sm:$0xff] }
 0x5c7   : > { %v2777_v19 = vcombine.high %v2751_v48, %v2759_v1  ;;  %v2793_v7 = vcombine.high %v2767_v8, %v2775_v9  ;;  %v2776_v20 = vcombine.low %v2751_v48, %v2759_v1  ;;  %v2792_v2 = vcombine.low %v2767_v8, %v2775_v9 }
 0x5c8   : > { %v2723_v21 = vrot.slane %v2709_v11, %v4378_v47  ;;  %v2739_v22 = vrot.slane %v2725_v13, %v4378_v47  ;;  %v2716_v24 = vrot.slane %v2708_v16, %v4378_v47  ;;  %v2732_v26 = vrot.slane %v2724_v18, %v4378_v47 }
 0x5c9   : > { %v2791_v36 = vrot.slane %v2777_v19, %v4378_v47  ;;  %v2807_v27 = vrot.slane %v2793_v7, %v4378_v47  ;;  %v2784_v28 = vrot.slane %v2776_v20, %v4378_v47  ;;  %v2800_v29 = vrot.slane %v2792_v2, %v4378_v47 }
 0x5ca   : > { %v2742_v31 = vcombine.low %v2723_v21, %v2739_v22  ;;  %v2740_v12 = vcombine.low %v2716_v24, %v2732_v26  ;;  %v2741_v32 = vcombine.high %v2716_v24, %v2732_v26  ;;  %v2743_v35 = vcombine.high %v2723_v21, %v2739_v22 }
 0x5cb   : > { %v2810_v42 = vcombine.low %v2791_v36, %v2807_v27  ;;  %v2809_v10 = vcombine.high %v2784_v28, %v2800_v29  ;;  %v2808_v17 = vcombine.low %v2784_v28, %v2800_v29  ;;  %v2811_v59 = vcombine.high %v2791_v36, %v2807_v27 }
 0x5cc   : > { %v2916_v8 = vsel (!%p3414_p7), %vm1706_vm3, %v4623_v50, 0.0  ;;  %v2917_v9 = vsel (!%p3414_p7), %vm1706_vm3, %v4649_v14, 0.0  ;;  %v2919_v11 = vsel (!%p3414_p7), %vm1706_vm3, %v4663_v23, 0.0  ;;  %v2923_v16 = vsel (!%p3414_p7), %vm1706_vm3, %v4615_v49, 0.0 }
 0x5cd   : > { %v3733_v37 = vpack.i.bf16 %v2810_v42, %v2742_v31  ;;  %v3728_v38 = vpack.i.bf16 %v2809_v10, %v2741_v32  ;;  %v3738_v39 = vpack.i.bf16 %v2811_v59, %v2743_v35  ;;  %v2918_v13 = vadd.f32 (!%p3414_p7), %v2917_v9, %v2916_v8 }
 0x5ce   : > { %v2924_v18 = vsel (!%p3414_p7), %vm1706_vm3, %v4644_v4, 0.0  ;;  %v2926_v19 = vsel (!%p3414_p7), %vm1706_vm3, %v4667_v25, 0.0  ;;  %v2921_v7 = vsel (!%p3414_p7), %vm1706_vm3, %v4678_v15, 0.0  ;;  %v2928_v14 = vsel (!%p3414_p7), %vm1706_vm3, %v4681_v33, 0.0 }
 0x5cf   : > { %3734 = vrot.lane.b32.xlu0 %v3733_v37, %s4046_s26  ;;  %3729 = vrot.lane.b32.xlu1 %v3728_v38, %s4047_s28  ;;  %v2925_v50 = vadd.f32 (!%p3414_p7), %v2924_v18, %v2923_v16  ;;  %v2920_v20 = vadd.f32 (!%p3414_p7), %v2919_v11, %v2918_v13 }
 0x5d1   : > { %v2927_v2 = vadd.f32 (!%p3414_p7), %v2926_v19, %v2925_v50  ;;  %v2922_v23 = vadd.f32 (!%p3414_p7), %v2921_v7, %v2920_v20 }
 0x5d3   : > { %3739 = vrot.lane.b32.xlu1 %v3738_v39, %s4048_s14  ;;  %v2929_v21 = vadd.f32 (!%p3414_p7), %v2928_v14, %v2927_v2  ;;  %v2930_v22 = vmul.f32 (!%p3414_p7), 0.25, %v2922_v23 }
 0x5d5   : > { %v2931_v24 = vmul.f32 (!%p3414_p7), 0.25, %v2929_v21  ;;  %2932 = vst.msk [vmem:[#allocation13] sm:$0xff] (!%p3414_p7), %vm1706_vm3, %v2930_v22 }
 0x5d7   : > { %2933 = vst.msk [vmem:[#allocation13 + $0x8] sm:$0xff] (!%p3414_p7), %vm1706_vm3, %v2931_v24 }
 0x641   : > { %v3735_v47 = vpop.permute.xlu0 %3734  ;;  %v3730_v40 = vpop.permute.xlu1 %3729 }
 0x642   : > { %v3732_v56 = vunpack.i.h.bf16 %v3730_v40  ;;  %v3731_v51 = vunpack.i.l.bf16 %v3730_v40  ;;  %v3737_v43 = vunpack.i.h.bf16 %v3735_v47  ;;  %v3736_v52 = vunpack.i.l.bf16 %v3735_v47 }
 0x644   : > { %v2836_v53 = vsel %vm1706_vm3, %v2740_v12, %v3731_v51  ;;  %v2837_v41 = vsel %vm1706_vm3, %v2808_v17, %v3732_v56 }
 0x645   : > { %v3740_v54 = vpop.permute.xlu1 %3739  ;;  %v2839_v34 = vsel %vm2838_vm5, %v2836_v53, %v3736_v52  ;;  %v2840_v45 = vsel %vm2838_vm5, %v2837_v41, %v3737_v43 }
 0x646   : > { %v3742_v55 = vunpack.i.h.bf16 %v3740_v54  ;;  %v3741_v44 = vunpack.i.l.bf16 %v3740_v54 }
 0x648   : > { %v2842_v57 = vsel %vm2841_vm6, %v2839_v34, %v3741_v44  ;;  %v2843_v58 = vsel %vm2841_vm6, %v2840_v45, %v3742_v55 }
 0x649   : > { %v2844_v60 = vpack.c.bf16 %v2843_v58, %v2842_v57 }
 0x64b   : > { %3602 = vmatmul.mubr.msk.bf16.vlgmr.msra.gmra.mrb[32].mxu0 %vm689_vm2, %v2844_v60 }
 0x71b   : > { %2915 = sbr.rel (%p3414_p7) target bundleno = 1826 (0x722), region = 112 }
 0x71e   : > { %v2905_v46 = vpop.f32.mrb[32].mxu0 }
 0x71f   : > { %v2906_v62 = vadd.f32 %v3410_v61, %v2905_v46  ;;  %v3603_v63 = vpop.f32.mrb[33].mxu0 }
 0x720   : > { %v2908_v0 = vpop.f32.mrb[34].mxu0 }
 0x721   : > { %v2909_v48 = vadd.f32 %v3410_v61, %v2908_v0  ;;  %v3604_v1 = vpop.f32.mrb[35].mxu0 }
 0x722 PF: > { %v2934_v49 = vadd.f32 %v2906_v62, %v4333_v5  ;;  %3605 = vmatprep.subr.bf16.mxu1 %v4038_v3  ;;  %3609 = vmatprep.mubr.msk.bf16.mxu1 %vm4039_vm1, %v4038_v3  ;;  %v3781_v12 = vld [vmem:[%s4884_s10] sm:$0xff]   ;;  %v3782_v32 = vld [vmem:[%s4884_s10 + $0x8] sm:$0xff]   ;;  %v3415_v40 = vld [vmem:[#allocation9] ss:$0 sm:$0xff]  ;;  %vm3095_vm7 = vcmask 523264   ;;  %s4924_s22 = sld [smem:[#allocation24_spill]] }
 0x723   : > { %v2935_v4 = vadd.f32 %v2909_v48, %v4335_v6  ;;  %3613 = vmatprep.subr.bf16.mxu0 %v4038_v3  ;;  %3621 = vmatprep.mubr.msk.bf16.mxu0 %vm4039_vm1, %v4038_v3  ;;  %v3783_v35 = vld [vmem:[%s4886_s12] sm:$0xff]   ;;  %v3784_v42 = vld [vmem:[%s4886_s12 + $0x8] sm:$0xff]   ;;  %v3416_v51 = vld [vmem:[#allocation11] ss:$0 sm:$0xff]  ;;  %s4925_s29 = sld [smem:[#allocation25_spill]] }
 0x724   : > { %v2936_v25 = vsel %vm689_vm2, %v2934_v49, 0.0  ;;  %3606 = vmatpush3.bf16.msra.mxu1 %v3781_v12  ;;  %3614 = vmatpush3.bf16.msra.mxu0 %v3783_v35  ;;  %v3785_v57 = vld [vmem:[%s4886_s12 + $0x10] sm:$0xff]   ;;  %v3786_v58 = vld [vmem:[%s4886_s12 + $0x18] sm:$0xff]   ;;  %v3417_v60 = vld [vmem:[%s4885_s11] ss:$0 sm:$0xff] }
 0x725   : > { %2937 = vadd.xlane.f32.xlu0 %v2936_v25  ;;  %v2939_v15 = vsel %vm689_vm2, %v2935_v4, 0.0  ;;  %3607 = vmatprep.subr.bf16.mxu1 %v4038_v3 }
 0x726   : > { %3615 = vmatprep.subr.bf16.mxu0 %v4038_v3 }
 0x728   : > { %3608 = vmatpush3.bf16.msra.mxu1 %v3782_v32  ;;  %3616 = vmatpush3.bf16.msra.mxu0 %v3784_v42 }
 0x729   : > { %2940 = vadd.xlane.f32.xlu0 %v2939_v15  ;;  %3617 = vmatprep.subr.bf16.mxu0 %v4038_v3  ;;  %v3428_v35 = vld [vmem:[%s4925_s29] ss:$0 sm:$0xff] }
 0x72c   : > { %3618 = vmatpush3.bf16.msra.mxu0 %v3785_v57 }
 0x72d   : > { %3619 = vmatprep.subr.bf16.mxu0 %v4038_v3  ;;  %v3421_v3 = vld [vmem:[%s4887_s13] ss:$0 sm:$0xff] }
 0x730   : > { %3620 = vmatpush3.bf16.msra.mxu0 %v3786_v58 }
 0x7b2   : > { %v2938_v33 = vpop.xlane.xlu0 %2937 }
 0x7b3   : > { %v2943_v5 = vmul.f32 0.03125, %v2938_v33 }
 0x7b5   : > { %v2945_v26 = vsub.f32 %v2934_v49, %v2943_v5 }
 0x7b6   : > { %v2941_v6 = vpop.xlane.xlu0 %2940 }
 0x7b7   : > { %v2944_v36 = vmul.f32 0.03125, %v2941_v6  ;;  %v2947_v27 = vmul.f32 %v2945_v26, %v2945_v26 }
 0x7b9   : > { %v2946_v28 = vsub.f32 %v2935_v4, %v2944_v36  ;;  %v2949_v29 = vsel %vm689_vm2, %v2947_v27, 0.0 }
 0x7ba   : > { %2950 = vadd.xlane.f32.xlu1 %v2949_v29 }
 0x7bb   : > { %v2948_v30 = vmul.f32 %v2946_v28, %v2946_v28 }
 0x7bd   : > { %v2952_v31 = vsel %vm689_vm2, %v2948_v30, 0.0 }
 0x7be   : > { %2953 = vadd.xlane.f32.xlu1 %v2952_v31  ;;  %v3427_v31 = vld [vmem:[%s4924_s22] ss:$0 sm:$0xff] }
 0x847   : > { %v2951_v10 = vpop.xlane.xlu1 %2950 }
 0x848   : > { %v2955_v17 = vmul.f32 0.03125, %v2951_v10 }
 0x84a   : > { %v2957_v59 = vadd.f32 1e-05, %v2955_v17 }
 0x84b   : > { %v2954_v37 = vpop.xlane.xlu1 %2953 }
 0x84c   : > { %3787 = vrsqrt.f32 %v2957_v59  ;;  %v2956_v38 = vmul.f32 0.03125, %v2954_v37 }
 0x84e   : > { %v2958_v39 = vadd.f32 1e-05, %v2956_v38 }
 0x850   : > { %3789 = vrsqrt.f32 %v2958_v39 }
 0x856   : > { %v3788_v47 = vpop.eup %3787 }
 0x857   : > { %v2961_v56 = vmul.f32 %v3788_v47, %v2945_v26 }
 0x859   : > { %v2970_v43 = vmul.f32 %v3415_v40, %v2961_v56 }
 0x85a   : > { %v3790_v52 = vpop.eup %3789 }
 0x85b   : > { %v2979_v53 = vadd.f32 %v3416_v51, %v2970_v43  ;;  %v2962_v41 = vmul.f32 %v3790_v52, %v2946_v28 }
 0x85d   : > { %2981 = vst.msk [vmem:[#allocation2] sm:$0xff] %vm689_vm2, %v2979_v53  ;;  %v2971_v54 = vmul.f32 %v3415_v40, %v2962_v41 }
 0x85f   : > { %v2980_v55 = vadd.f32 %v3416_v51, %v2971_v54 }
 0x861   : > { %2982 = vst.msk [vmem:[#allocation2 + $0x8] sm:$0xff] %vm689_vm2, %v2980_v55 }
 0x864   : > { %v2983_v44 = vld [vmem:[#allocation2] sm:$0xff] }
 0x868   : > { %v2984_v34 = vld [vmem:[#allocation2 + $0x8] sm:$0xff] }
 0x869   : > { %v2985_v45 = vpack.c.bf16 %v2984_v34, %v2983_v44 }
 0x86b   : > { %3610 = vmatmul.mubr.msk.bf16.vlgmr.msra.gmra.mrb[40].mxu1 %vm689_vm2, %v2985_v45 }
 0x93e   : > { %v3046_v61 = vpop.f32.mrb[40].mxu1 }
 0x93f   : > { %v3047_v46 = vadd.f32 %v3417_v60, %v3046_v61  ;;  %v3611_v62 = vpop.f32.mrb[41].mxu1 }
 0x940   : > { %v3049_v63 = vpop.f32.mrb[42].mxu1 }
 0x941   : > { %v3050_v0 = vadd.f32 %v3417_v60, %v3049_v63  ;;  %v3612_v48 = vpop.f32.mrb[43].mxu1  ;;  %v3053_v1 = vmax.f32 %v3047_v46, 0.0 }
 0x943   : > { %v3054_v8 = vmax.f32 %v3050_v0, 0.0 }
 0x945   : > { %v3055_v9 = vpack.c.bf16 %v3054_v8, %v3053_v1 }
 0x947   : > { %3622 = vmatmul.mubr.msk.bf16.vlgmr.msra.gmra.mrb[36].mxu0 %vm3095_vm7, %v3055_v9 }
 0xa1a   : > { %v3133_v11 = vpop.f32.mrb[36].mxu0 }
 0xa1b   : > { %v3134_v13 = vadd.f32 %v3421_v3, %v3133_v11  ;;  %v3623_v16 = vpop.f32.mrb[37].mxu0 }
 0xa1c   : > { %v3136_v18 = vpop.f32.mrb[38].mxu0 }
 0xa1d   : > { %v3137_v19 = vadd.f32 %v3421_v3, %v3136_v18  ;;  %v3624_v7 = vpop.f32.mrb[39].mxu0  ;;  %v3140_v50 = vadd.f32 %v3134_v13, %v2983_v44 }
 0xa1f   : > { %v3142_v20 = vsel %vm689_vm2, %v3140_v50, 0.0  ;;  %v3141_v14 = vadd.f32 %v3137_v19, %v2984_v34 }
 0xa20   : > { %3143 = vadd.xlane.f32.xlu0 %v3142_v20 }
 0xa21   : > { %v3145_v2 = vsel %vm689_vm2, %v3141_v14, 0.0 }
 0xa22   : > { %3146 = vadd.xlane.f32.xlu1 %v3145_v2 }
 0xaad   : > { %v3144_v23 = vpop.xlane.xlu0 %3143 }
 0xaae   : > { %v3148_v21 = vmul.f32 0.03125, %v3144_v23 }
 0xaaf   : > { %v3147_v22 = vpop.xlane.xlu1 %3146 }
 0xab0   : > { %v3150_v24 = vsub.f32 %v3140_v50, %v3148_v21  ;;  %v3149_v49 = vmul.f32 0.03125, %v3147_v22 }
 0xab2   : > { %v3151_v4 = vsub.f32 %v3141_v14, %v3149_v49  ;;  %v3152_v25 = vmul.f32 %v3150_v24, %v3150_v24 }
 0xab4   : > { %v3154_v15 = vsel %vm689_vm2, %v3152_v25, 0.0  ;;  %v3153_v33 = vmul.f32 %v3151_v4, %v3151_v4 }
 0xab5   : > { %3155 = vadd.xlane.f32.xlu0 %v3154_v15 }
 0xab6   : > { %v3157_v5 = vsel %vm689_vm2, %v3153_v33, 0.0 }
 0xab7   : > { %3158 = vadd.xlane.f32.xlu1 %v3157_v5 }
 0xb42   : > { %v3156_v26 = vpop.xlane.xlu0 %3155 }
 0xb43   : > { %v3160_v6 = vmul.f32 0.03125, %v3156_v26 }
 0xb44   : > { %v3159_v36 = vpop.xlane.xlu1 %3158 }
 0xb45   : > { %v3162_v27 = vadd.f32 1e-05, %v3160_v6  ;;  %v3161_v28 = vmul.f32 0.03125, %v3159_v36 }
 0xb47   : > { %3791 = vrsqrt.f32 %v3162_v27  ;;  %v3163_v29 = vadd.f32 1e-05, %v3161_v28 }
 0xb49   : > { %3793 = vrsqrt.f32 %v3163_v29 }
 0xb51   : > { %v3792_v30 = vpop.eup %3791 }
 0xb52   : > { %v3166_v12 = vmul.f32 %v3792_v30, %v3150_v24 }
 0xb53   : > { %v3794_v32 = vpop.eup %3793 }
 0xb54   : > { %v3175_v42 = vmul.f32 %v3427_v31, %v3166_v12  ;;  %v3167_v10 = vmul.f32 %v3794_v32, %v3151_v4  ;;  %3190 = sbr.rel (%p3414_p7) target bundleno = 2915 (0xb63), region = 116 }
 0xb56   : > { %v3184_v17 = vadd.f32 %v3428_v35, %v3175_v42  ;;  %v3176_v59 = vmul.f32 %v3427_v31, %v3167_v10 }
 0xb58   : > { %3186 = vst.msk [vmem:[#allocation2] sm:$0xff] %vm689_vm2, %v3184_v17  ;;  %v3185_v37 = vadd.f32 %v3428_v35, %v3176_v59 }
 0xb5a   : > { %3187 = vst.msk [vmem:[#allocation2 + $0x8] sm:$0xff] %vm689_vm2, %v3185_v37 }
 0xb5f   : > { %v3191_v38 = vld [vmem:[#allocation2] sm:$0xff] }
 0xb60   : > { %3193 = vst.msk [vmem:[#allocation12] sm:$0xff] %vm689_vm2, %v3191_v38 }
 0xb61   : > { %v3192_v39 = vld [vmem:[#allocation2 + $0x8] sm:$0xff] }
 0xb62   : > { %3194 = vst.msk [vmem:[#allocation12 + $0x8] sm:$0xff] %vm689_vm2, %v3192_v39 }
 0xb63 PF: > { %s4926_s1 = sld [smem:[#allocation20_spill]]  ;;  %s4049_s30 = smov [#allocation12]  }
 0xb64   : > { %s3204_s26 = sshll.u32 %s4049_s30, 4  ;;  %s4050_s14 = smov [#allocation13]   ;;  %s3205_s26 = int_to_ptr.vmem [resolvable:$true] %s3204_s26 }
 0xb65   : > { %s3220_s24 = sshll.u32 %s4050_s14, 4  ;;  %s3935_s19 = scalar_lea.vmem %s3205_s26, 256  ;;  %s3221_s24 = int_to_ptr.vmem [resolvable:$true] %s3220_s24 }
 0xb66   : > { %p3936_p13 = scmp.ne.s32.totalorder %s3205_s26, %s3935_s19  ;;  %p3942_p4 = scmp.lt.s32.totalorder %s3205_s26, %s3205_s26 }
 0xb67   : > { %p3943_p6 = scmp.lt.s32.totalorder %s3935_s19, %s3935_s19 }
 0xb69   : > { %s4927_s6 = sadd.s32 4294967295, %s4926_s1   ;;  %p3944_p8 = por %p3943_p6, %p3942_p4 }
 0xb6a   : > { %p4815_p12 = scmp.eq.s32.totalorder %s4927_s6, 1 }
 0xb6c   : > { %p3937_p0 = pnand %p3936_p13, %p4815_p12 }
 0xb6e   : > { %p3938_p1 = pneg %p3937_p0 }
 0xb70   : > { %p3945_p9 = pnand %p3944_p8, %p3938_p1 }
 0xb72   : > { %3948 = shalt.err (!%p3945_p9)
}
 0xb73   : > { %s4929_s27 = sld [smem:[#allocation26_spill]] }
 0xb79   : > { %s3949_s22 = scalar_lea.hbm %s4929_s27, 256 }
 0xb7a   : > { %p3950_p10 = scmp.ne.s32.totalorder %s4929_s27, %s3949_s22  ;;  %p3955_p3 = scmp.lt.u32.totalorder %s3949_s22, %s4929_s27 }
 0xb7c   : > { %p3951_p11 = pnand %p3950_p10, %p4815_p12 }
 0xb7e   : > { %p3952_p2 = pneg %p3951_p11 }
 0xb80   : > { %p3957_p5 = pnand %p3955_p3, %p3952_p2 }
 0xb82   : > { %3960 = shalt.err (!%p3957_p5)
}
 0xb83   : > { %s4051_s6 = smov 128   ;;  %s3961_s19 = scalar_lea.vmem %s3221_s24, 256 }
 0xb84   : > { %3646 = dma.vmem_to_hbm [thread:$0]  (%p4815_p12), %s3205_s26, 256, %s4929_s27, [#allocation5], %s4051_s6, %s4051_s6, %s4047_s28  }
 0xb85   : > { %p3962_p7 = scmp.ne.s32.totalorder %s3221_s24, %s3961_s19  ;;  %p3968_p1 = scmp.lt.s32.totalorder %s3221_s24, %s3221_s24 }
 0xb86   : > { %p3969_p4 = scmp.lt.s32.totalorder %s3961_s19, %s3961_s19 }
 0xb87   : > { %p3963_p13 = pnand %p3962_p7, %p4815_p12 }
 0xb88   : > { %p3970_p6 = por %p3969_p4, %p3968_p1 }
 0xb89   : > { %p3964_p0 = pneg %p3963_p13 }
 0xb8b   : > { %p3971_p8 = pnand %p3970_p6, %p3964_p0 }
 0xb8d   : > { %3974 = shalt.err (!%p3971_p8)
}
 0xb8e   : > { %s4930_s22 = sld [smem:[#allocation27_spill]] }
 0xb94   : > { %s3975_s16 = scalar_lea.hbm %s4930_s22, 256 }
 0xb95   : > { %p3976_p9 = scmp.ne.s32.totalorder %s4930_s22, %s3975_s16  ;;  %p3981_p2 = scmp.lt.u32.totalorder %s3975_s16, %s4930_s22 }
 0xb97   : > { %p3977_p10 = pnand %p3976_p9, %p4815_p12 }
 0xb99   : > { %p3978_p11 = pneg %p3977_p10 }
 0xb9b   : > { %p3983_p3 = pnand %p3981_p2, %p3978_p11 }
 0xb9d   : > { %3986 = shalt.err (!%p3983_p3)
}
 0xb9e   : > { %3648 = dma.vmem_to_hbm [thread:$0]  (%p4815_p12), %s3221_s24, 256, %s4930_s22, [#allocation14], %s4051_s6, %s4051_s6, %s4047_s28  }
 0xb9f   : > { %4012 = dma.done.wait (%p4815_p12), [#allocation5], 256  }
 0xba0   : > { %4014 = vsyncadd (%p4815_p12), [#allocation5], 4294967040 }
 0xba1   : > { %4016 = dma.done.wait (%p4815_p12), [#allocation14], 256  }
 0xba2   : > { %4018 = vsyncadd (%p4815_p12), [#allocation14], 4294967040 }
 0xba3 PF: > { %s4931_s19 = sld [smem:[#allocation20_spill]]  ;;  %s4932_s24 = smov %s4025_s25 }
 0xba4   : > { %s4933_s25 = smov %s4935_s23 }
 0xba9   : > { %s33_s26 = sadd.s32 1, %s4931_s19  }
 0xbaa   : > { %p30_p5 = scmp.ge.s32.totalorder %s33_s26, 4  }
 0xbac   :  { %32 = sbr.rel (!%p30_p5) target bundleno = 14 (0xe), region = 157 }
 0xbb3   :  { %3240 = vsyncpa [#allocation4], 1 }
 0xbb4   :  { %3242 = vsyncpa [#allocation4 + $0x1], 1 }
 0xbb5   :  { %3243 = vsyncpa [#allocation7], 1 }
 0xbb6   :  { %3244 = vsyncpa [#allocation10], 1 }
 0xbb7   :  { %3245 = vsyncpa [#allocation5], 1 }
 0xbb8   :  { %3247 = vsyncpa [#allocation5 + $0x1], 1 }
 0xbb9   :  { %3248 = vsyncpa [#allocation14], 1 }

</bundles_post_ra>
